<compile_context>
chip_gen: v7x
topology: tpu7x:2x2x1
jax: 0.10.0
libtpu: 0.0.40
codegen_flags: <defaults>
</compile_context>

<pallas_src>
import functools

import jax
import jax.numpy as jnp
from jax.experimental import pallas as pl
from jax.experimental.pallas import tpu as pltpu

LEAKY_SLOPE = 0.01                 # F.leaky_relu default negative_slope
BN_EPS = 1e-5                      # nn.BatchNorm2d default eps
KSIZE, STRIDE, PAD = 4, 2, 1


def _round_up(x, m):
    return ((x + m - 1) // m) * m


@functools.lru_cache(maxsize=1)
def _vmem_limit_bytes():
    """Per-generation VMEM cap: ~75% of physical (v7x 64MiB->48MiB,
    v5e/v6e 128MiB->96MiB), never above 100 MiB."""
    cap = 64 * 1024 * 1024
    try:
        cap = int(pltpu.get_tpu_info().vmem_capacity_bytes)
    except Exception:
        pass
    return min(cap * 3 // 4, 100 * 1024 * 1024)


# ----------------------------------------------------------------------------
# Pallas kernels (transposed compute: out = W (Cout, K) @ patches (K, M_tile))
# ----------------------------------------------------------------------------
def _conv_lrelu_kernel(w_ref, p_ref, o_ref):
    """Layer 1: conv matmul + leaky_relu (no BN). Output (Cout, tile_M), lane-dense."""
    y = jnp.dot(w_ref[...], p_ref[...], preferred_element_type=jnp.float32)
    o_ref[...] = jnp.where(y >= 0.0, y, LEAKY_SLOPE * y).astype(o_ref.dtype)


def _conv_bn_lrelu_kernel(w_ref, p_ref, gamma_ref, beta_ref, o_ref,
                          y_scr, sum_scr, sq_scr, scale_scr, shift_scr,
                          *, block_m, inv_m):
    """BN layers, fused: grid = (pass, M_tile), both sequential.

    pass 0: y = W @ patches; keep y in VMEM scratch; accumulate lane-partial
            per-channel sum / sum-of-squares.
    pass 1: (tile 0) reduce lanes, fold batch stats into scale/shift;
            every tile: y*scale + shift, leaky_relu, store bf16 output.
    """
    s = pl.program_id(0)
    i = pl.program_id(1)

    @pl.when(s == 0)
    def _conv_and_stats():
        @pl.when(i == 0)
        def _():
            sum_scr[...] = jnp.zeros_like(sum_scr)
            sq_scr[...] = jnp.zeros_like(sq_scr)

        y = jnp.dot(w_ref[...], p_ref[...], preferred_element_type=jnp.float32)
        y_scr[i] = y                       # resident f32 tile, never hits HBM
        # Lane-partial stats: static 128-wide chunk adds on the VPU; the single
        # cross-lane (XLU) reduce happens once at the start of pass 1.
        ps = y[:, 0:128]
        pq = ps * ps
        for c in range(1, block_m // 128):
            chunk = y[:, c * 128:(c + 1) * 128]
            ps = ps + chunk
            pq = pq + chunk * chunk
        sum_scr[...] = sum_scr[...] + ps
        sq_scr[...] = sq_scr[...] + pq

    @pl.when(s == 1)
    def _bn_apply():
        @pl.when(i == 0)
        def _():
            tot = jnp.sum(sum_scr[...], axis=1, keepdims=True)
            tot_sq = jnp.sum(sq_scr[...], axis=1, keepdims=True)
            # PyTorch BatchNorm2d training-mode: biased batch stats over (N,H,W).
            # Padded (zero) patch columns contribute 0, so dividing by the true
            # M is exact.
            mean = tot * inv_m
            var = jnp.maximum(tot_sq * inv_m - mean * mean, 0.0)
            scale = gamma_ref[...] * jax.lax.rsqrt(var + BN_EPS)
            scale_scr[...] = scale
            shift_scr[...] = beta_ref[...] - mean * scale

        t = y_scr[i] * scale_scr[...] + shift_scr[...]
        o_ref[...] = jnp.where(t >= 0.0, t, LEAKY_SLOPE * t).astype(o_ref.dtype)


# ----------------------------------------------------------------------------
# pallas_call wrappers
# ----------------------------------------------------------------------------
def conv_lrelu(w_mat, patches, block_m, out_dtype):
    cout, K = w_mat.shape
    _, m_pad = patches.shape
    num_tiles = m_pad // block_m
    return pl.pallas_call(
        _conv_lrelu_kernel,
        out_shape=jax.ShapeDtypeStruct((cout, m_pad), out_dtype),
        grid=(num_tiles,),
        in_specs=[
            pl.BlockSpec((cout, K), lambda i: (0, 0)),        # weights resident
            pl.BlockSpec((K, block_m), lambda i: (0, i)),
        ],
        out_specs=pl.BlockSpec((cout, block_m), lambda i: (0, i)),
        compiler_params=pltpu.CompilerParams(
            dimension_semantics=("parallel",),
            vmem_limit_bytes=_vmem_limit_bytes()),
    )(w_mat, patches)


def conv_bn_lrelu(w_mat, patches, gamma, beta, m_valid, block_m):
    cout, K = w_mat.shape
    _, m_pad = patches.shape
    num_tiles = m_pad // block_m
    last = num_tiles - 1

    kernel = functools.partial(_conv_bn_lrelu_kernel,
                               block_m=block_m, inv_m=1.0 / float(m_valid))
    return pl.pallas_call(
        kernel,
        out_shape=jax.ShapeDtypeStruct((cout, m_pad), jnp.bfloat16),
        grid=(2, num_tiles),
        in_specs=[
            pl.BlockSpec((cout, K), lambda s, i: (0, 0)),
            # Pass 1 pins the patch block to the last tile -> nothing is
            # re-streamed while BN is applied from the VMEM-resident y.
            pl.BlockSpec((K, block_m), lambda s, i: (0, i * (1 - s) + last * s)),
            pl.BlockSpec((cout, 1), lambda s, i: (0, 0)),
            pl.BlockSpec((cout, 1), lambda s, i: (0, 0)),
        ],
        # Output index pinned to tile 0 during pass 0 -> no garbage write-backs;
        # each tile is written exactly once during pass 1.
        out_specs=pl.BlockSpec((cout, block_m), lambda s, i: (0, i * s)),
        scratch_shapes=[
            pltpu.VMEM((num_tiles, cout, block_m), jnp.float32),  # resident y
            pltpu.VMEM((cout, 128), jnp.float32),                 # lane-partial sum
            pltpu.VMEM((cout, 128), jnp.float32),                 # lane-partial sum sq
            pltpu.VMEM((cout, 1), jnp.float32),                   # folded scale
            pltpu.VMEM((cout, 1), jnp.float32),                   # folded shift
        ],
        compiler_params=pltpu.CompilerParams(
            # Both axes must be sequential: y / stat scratch is resident across
            # the whole (pass, tile) grid (no megacore split for this kernel).
            dimension_semantics=("arbitrary", "arbitrary"),
            vmem_limit_bytes=_vmem_limit_bytes()),
    )(w_mat, patches, gamma, beta)


# ----------------------------------------------------------------------------
# Plain-JAX glue
# ----------------------------------------------------------------------------
def im2col_T(act, block_m, even_tiles=False, k=KSIZE, stride=STRIDE, pad=PAD):
    """act: (C, N, H, W) -> transposed patch matrix (C*k*k, M_pad) in bf16.

    Patch rows ordered (cin, kh, kw) to match w.reshape(Cout, Cin*Kh*Kw);
    patch columns ordered (n, ho, wo); M zero-padded to a tile multiple.
    """
    # TODO(synk): fuse im2col into the conv kernels (phase-split / strided DMA of
    # the (C,N,H,W) activation into VMEM) to drop the ~4x-duplicated patch matrix
    # (largest remaining HBM term); kept in plain JAX because the stride-2
    # lane-dim gathers and sub-128 reshapes it needs don't lower robustly in the
    # lane-dense (Cout, M) layout.
    C, N, H, W = act.shape
    Ho = (H + 2 * pad - k) // stride + 1
    Wo = (W + 2 * pad - k) // stride + 1
    xp = jnp.pad(act, ((0, 0), (0, 0), (pad, pad), (pad, pad)))
    cols = []
    for kh in range(k):
        for kw in range(k):
            cols.append(
                xp[:, :, kh: kh + stride * Ho: stride, kw: kw + stride * Wo: stride])
    patches = jnp.stack(cols, axis=1).reshape(C * k * k, N * Ho * Wo)
    M = N * Ho * Wo
    blk = min(block_m, _round_up(M, 128))   # effective (multiple-of-128) tile
    m_pad = _round_up(M, blk)
    if even_tiles and (m_pad // blk) > 1 and (m_pad // blk) % 2 == 1:
        m_pad += blk                        # v7x megacore: balanced tile count
    if m_pad > M:
        patches = jnp.pad(patches, ((0, 0), (0, m_pad - M)))
    return patches.astype(jnp.bfloat16), Ho, Wo, M, blk


# ----------------------------------------------------------------------------
# Discriminator
# ----------------------------------------------------------------------------
def init_params(key, conv_dim):
    ks = jax.random.split(key, 8)
    c1, c2, c4 = conv_dim, conv_dim * 2, conv_dim * 4
    p = {}
    p["w1"] = 0.02 * jax.random.normal(ks[0], (c1, 3, KSIZE, KSIZE), jnp.float32)
    p["w2"] = 0.02 * jax.random.normal(ks[1], (c2, c1, KSIZE, KSIZE), jnp.float32)
    p["g2"] = 1.0 + 0.1 * jax.random.normal(ks[2], (c2,), jnp.float32)
    p["b2"] = 0.1 * jax.random.normal(ks[3], (c2,), jnp.float32)
    p["w3"] = 0.02 * jax.random.normal(ks[4], (c4, c2, KSIZE, KSIZE), jnp.float32)
    p["g3"] = 1.0 + 0.1 * jax.random.normal(ks[5], (c4,), jnp.float32)
    p["b3"] = 0.1 * jax.random.normal(ks[6], (c4,), jnp.float32)
    fc_in = c4 * 4 * 4
    p["fc_w"] = 0.02 * jax.random.normal(ks[7], (fc_in, 1), jnp.float32)
    p["fc_b"] = jnp.zeros((1, 1), jnp.float32)
    return p


def discriminator_forward(params, x, conv_dim, block_m=1024):
    """x: NCHW f32; spatial must be 32x32 so the final feature map is 4x4."""
    assert block_m % 128 == 0
    N = x.shape[0]
    c1, c2, c4 = conv_dim, conv_dim * 2, conv_dim * 4

    # Keep activations in (C, N, H, W): the (Cout, M) kernel output reshapes
    # into this layout for free, so no per-layer transposes.
    act = jnp.transpose(x, (1, 0, 2, 3))

    # layer 1: conv + leaky_relu (no BN), fused Pallas kernel.
    p, ho, wo, m, blk = im2col_T(act, block_m, even_tiles=True)
    l1_dtype = jnp.float32 if c1 < 16 else jnp.bfloat16   # avoid half-packed bf16 sublanes
    a = conv_lrelu(params["w1"].reshape(c1, -1).astype(jnp.bfloat16), p, blk, l1_dtype)
    act = a[:, :m].reshape(c1, N, ho, wo)

    # layer 2: fused conv + BN(batch stats) + leaky_relu (y never leaves VMEM).
    p, ho, wo, m, blk = im2col_T(act, block_m)
    a = conv_bn_lrelu(params["w2"].reshape(c2, -1).astype(jnp.bfloat16), p,
                      params["g2"].reshape(-1, 1).astype(jnp.float32),
                      params["b2"].reshape(-1, 1).astype(jnp.float32), m, blk)
    act = a[:, :m].reshape(c2, N, ho, wo)

    # layer 3: fused conv + BN(batch stats) + leaky_relu.
    p, ho, wo, m, blk = im2col_T(act, block_m)
    a = conv_bn_lrelu(params["w3"].reshape(c4, -1).astype(jnp.bfloat16), p,
                      params["g3"].reshape(-1, 1).astype(jnp.float32),
                      params["b3"].reshape(-1, 1).astype(jnp.float32), m, blk)
    act = a[:, :m].reshape(c4, N, ho, wo)                 # (C4, N, 4, 4)

    # Flatten exactly like x.view(-1, conv_dim*4*4*4) on NCHW (C-major), once.
    x_flat = jnp.transpose(act, (1, 0, 2, 3)).reshape(N, c4 * ho * wo)
    # fc (out_dim=1) in plain JAX: a Pallas version would be fully-masked stores
    # and its compute (~512*N MACs) is negligible.
    return x_flat.astype(jnp.float32) @ params["fc_w"] + params["fc_b"]


if __name__ == "__main__":
    conv_dim = 8
    batch = 4
    key = jax.random.PRNGKey(0)
    k_param, k_x = jax.random.split(key)
    params = init_params(k_param, conv_dim)
    # Spatial must be 32x32 so the final feature map is 4x4 (matches fc dims).
    x = jax.random.normal(k_x, (batch, 3, 32, 32), jnp.float32)

    # block_m=128 keeps multi-tile grids (exercising both passes over >1 tile)
    # at this tiny demo size; use the 1024 default at production batch sizes.
    fwd = jax.jit(functools.partial(discriminator_forward,
                                    conv_dim=conv_dim, block_m=128))
    logits = fwd(params, x)
    jax.block_until_ready(logits)
    assert logits.shape == (batch, 1), logits.shape
    print("KERNEL_OK")
</pallas_src>

<mosaic_0001>
module attributes {stable_mosaic.version = 11 : i64} {
  func.func @_conv_lrelu_kernel(%arg0: i32, %arg1: memref<8x48xbf16, #tpu.memory_space<vmem>>, %arg2: memref<48x128xbf16, #tpu.memory_space<vmem>>, %arg3: memref<8x128xf32, #tpu.memory_space<vmem>>) attributes {dimension_semantics = [#tpu.dimension_semantics<parallel>], iteration_bounds = array<i64: 8>, scalar_prefetch = 0 : i64, scratch_operands = 0 : i64, tpu.core_type = #tpu.core_type<tc>, window_params = [{pipeline_mode = #tpu.pipeline_mode<synchronous>, transform_indices = @transform_0, window_bounds = array<i64: 8, 48>}, {transform_indices = @transform_1, window_bounds = array<i64: 48, 128>}, {transform_indices = @transform_2, window_bounds = array<i64: 8, 128>}]} {
    %c0 = arith.constant 0 : index
    %c0_0 = arith.constant 0 : index
    %0 = vector.load %arg1[%c0, %c0_0] : memref<8x48xbf16, #tpu.memory_space<vmem>>, vector<8x48xbf16>
    %c0_1 = arith.constant 0 : index
    %c0_2 = arith.constant 0 : index
    %1 = vector.load %arg2[%c0_1, %c0_2] : memref<48x128xbf16, #tpu.memory_space<vmem>>, vector<48x128xbf16>
    %cst = arith.constant dense<0.000000e+00> : vector<8x128xf32>
    %2 = tpu.matmul %0, %1, %cst {dimension_numbers = #tpu.dot_dimension_numbers<[1], [0], [0], [1], [0, 0, 1, 1], [], []>} : vector<8x48xbf16>, vector<48x128xbf16>, vector<8x128xf32> -> vector<8x128xf32>
    %cst_3 = arith.constant 0.000000e+00 : f32
    %3 = vector.broadcast %cst_3 : f32 to vector<8x128xf32>
    %4 = arith.cmpf oge, %2, %3 : vector<8x128xf32>
    %cst_4 = arith.constant 0.00999999977 : f32
    %5 = vector.broadcast %cst_4 : f32 to vector<8x128xf32>
    %6 = arith.mulf %5, %2 : vector<8x128xf32>
    %7 = arith.select %4, %2, %6 : vector<8x128xi1>, vector<8x128xf32>
    %c0_5 = arith.constant 0 : index
    %c0_6 = arith.constant 0 : index
    %8 = vector.load %arg3[%c0_5, %c0_6] : memref<8x128xf32, #tpu.memory_space<vmem>>, vector<8x128xf32>
    tpu.vector_store %arg3[%c0_5, %c0_6], %7 {strides = array<i32>} : memref<8x128xf32, #tpu.memory_space<vmem>>, vector<8x128xf32>,
    return
  }
  func.func @transform_0(%arg0: i32) -> (i32, i32) {
    %c0_i32 = arith.constant 0 : i32
    %c0_i32_0 = arith.constant 0 : i32
    %c0_i32_1 = arith.constant 0 : i32
    return %c0_i32, %c0_i32_0 : i32, i32
  }
  func.func @transform_1(%arg0: i32) -> (i32, i32) {
    %c0_i32 = arith.constant 0 : i32
    %c0_i32_0 = arith.constant 0 : i32
    return %c0_i32, %arg0 : i32, i32
  }
  func.func @transform_2(%arg0: i32) -> (i32, i32) {
    %c0_i32 = arith.constant 0 : i32
    %c0_i32_0 = arith.constant 0 : i32
    return %c0_i32, %arg0 : i32, i32
  }
}

module attributes {stable_mosaic.version = 11 : i64} {
  func.func @_conv_bn_lrelu_kernel(%arg0: i32, %arg1: i32, %arg2: memref<16x128xbf16, #tpu.memory_space<vmem>>, %arg3: memref<128x128xbf16, #tpu.memory_space<vmem>>, %arg4: memref<16x1xf32, #tpu.memory_space<vmem>>, %arg5: memref<16x1xf32, #tpu.memory_space<vmem>>, %arg6: memref<16x128xbf16, #tpu.memory_space<vmem>>, %arg7: memref<2x16x128xf32, #tpu.memory_space<vmem>>, %arg8: memref<16x128xf32, #tpu.memory_space<vmem>>, %arg9: memref<16x128xf32, #tpu.memory_space<vmem>>, %arg10: memref<16x1xf32, #tpu.memory_space<vmem>>, %arg11: memref<16x1xf32, #tpu.memory_space<vmem>>) attributes {dimension_semantics = [#tpu.dimension_semantics<arbitrary>, #tpu.dimension_semantics<arbitrary>], iteration_bounds = array<i64: 2, 2>, scalar_prefetch = 0 : i64, scratch_operands = 5 : i64, tpu.core_type = #tpu.core_type<tc>, window_params = [{pipeline_mode = #tpu.pipeline_mode<synchronous>, transform_indices = @transform_0, window_bounds = array<i64: 16, 128>}, {transform_indices = @transform_1, window_bounds = array<i64: 128, 128>}, {pipeline_mode = #tpu.pipeline_mode<synchronous>, transform_indices = @transform_2, window_bounds = array<i64: 16, 1>}, {pipeline_mode = #tpu.pipeline_mode<synchronous>, transform_indices = @transform_3, window_bounds = array<i64: 16, 1>}, {transform_indices = @transform_4, window_bounds = array<i64: 16, 128>}]} {
    %c0_i32 = arith.constant 0 : i32
    %0 = arith.cmpi eq, %arg0, %c0_i32 : i32
    %1 = arith.extui %0 : i1 to i32
    %c0_i32_0 = arith.constant 0 : i32
    %2 = arith.cmpi ne, %1, %c0_i32_0 : i32
    scf.if %2 {
      %c0_i32_2 = arith.constant 0 : i32
      %6 = arith.cmpi eq, %arg1, %c0_i32_2 : i32
      %7 = arith.extui %6 : i1 to i32
      %c0_i32_3 = arith.constant 0 : i32
      %8 = arith.cmpi ne, %7, %c0_i32_3 : i32
      scf.if %8 {
        %cst_17 = arith.constant 0.000000e+00 : f32
        %23 = vector.broadcast %cst_17 : f32 to vector<16x128xf32>
        %c0_18 = arith.constant 0 : index
        %c0_19 = arith.constant 0 : index
        %24 = vector.load %arg8[%c0_18, %c0_19] : memref<16x128xf32, #tpu.memory_space<vmem>>, vector<16x128xf32>
        tpu.vector_store %arg8[%c0_18, %c0_19], %23 {strides = array<i32>} : memref<16x128xf32, #tpu.memory_space<vmem>>, vector<16x128xf32>,
        %cst_20 = arith.constant 0.000000e+00 : f32
        %25 = vector.broadcast %cst_20 : f32 to vector<16x128xf32>
        %c0_21 = arith.constant 0 : index
        %c0_22 = arith.constant 0 : index
        %26 = vector.load %arg9[%c0_21, %c0_22] : memref<16x128xf32, #tpu.memory_space<vmem>>, vector<16x128xf32>
        tpu.vector_store %arg9[%c0_21, %c0_22], %25 {strides = array<i32>} : memref<16x128xf32, #tpu.memory_space<vmem>>, vector<16x128xf32>,
      } else {
      }
      %c0 = arith.constant 0 : index
      %c0_4 = arith.constant 0 : index
      %9 = vector.load %arg2[%c0, %c0_4] : memref<16x128xbf16, #tpu.memory_space<vmem>>, vector<16x128xbf16>
      %c0_5 = arith.constant 0 : index
      %c0_6 = arith.constant 0 : index
      %10 = vector.load %arg3[%c0_5, %c0_6] : memref<128x128xbf16, #tpu.memory_space<vmem>>, vector<128x128xbf16>
      %cst = arith.constant dense<0.000000e+00> : vector<16x128xf32>
      %11 = tpu.matmul %9, %10, %cst {dimension_numbers = #tpu.dot_dimension_numbers<[1], [0], [0], [1], [0, 0, 1, 1], [], []>} : vector<16x128xbf16>, vector<128x128xbf16>, vector<16x128xf32> -> vector<16x128xf32>
      %12 = arith.index_cast %arg1 : i32 to index
      %c0_7 = arith.constant 0 : index
      %c0_8 = arith.constant 0 : index
      %13 = vector.load %arg7[%12, %c0_7, %c0_8] : memref<2x16x128xf32, #tpu.memory_space<vmem>>, vector<1x16x128xf32>
      %14 = vector.shape_cast %13 : vector<1x16x128xf32> to vector<16x128xf32>
      %15 = vector.shape_cast %11 : vector<16x128xf32> to vector<1x16x128xf32>
      tpu.vector_store %arg7[%12, %c0_7, %c0_8], %15 {strides = array<i32>} : memref<2x16x128xf32, #tpu.memory_space<vmem>>, vector<1x16x128xf32>,
      %16 = arith.mulf %11, %11 : vector<16x128xf32>
      %c0_9 = arith.constant 0 : index
      %c0_10 = arith.constant 0 : index
      %17 = vector.load %arg8[%c0_9, %c0_10] : memref<16x128xf32, #tpu.memory_space<vmem>>, vector<16x128xf32>
      %18 = arith.addf %17, %11 : vector<16x128xf32>
      %c0_11 = arith.constant 0 : index
      %c0_12 = arith.constant 0 : index
      %19 = vector.load %arg8[%c0_11, %c0_12] : memref<16x128xf32, #tpu.memory_space<vmem>>, vector<16x128xf32>
      tpu.vector_store %arg8[%c0_11, %c0_12], %18 {strides = array<i32>} : memref<16x128xf32, #tpu.memory_space<vmem>>, vector<16x128xf32>,
      %c0_13 = arith.constant 0 : index
      %c0_14 = arith.constant 0 : index
      %20 = vector.load %arg9[%c0_13, %c0_14] : memref<16x128xf32, #tpu.memory_space<vmem>>, vector<16x128xf32>
      %21 = arith.addf %20, %16 : vector<16x128xf32>
      %c0_15 = arith.constant 0 : index
      %c0_16 = arith.constant 0 : index
      %22 = vector.load %arg9[%c0_15, %c0_16] : memref<16x128xf32, #tpu.memory_space<vmem>>, vector<16x128xf32>
      tpu.vector_store %arg9[%c0_15, %c0_16], %21 {strides = array<i32>} : memref<16x128xf32, #tpu.memory_space<vmem>>, vector<16x128xf32>,
    } else {
    }
    %c1_i32 = arith.constant 1 : i32
    %3 = arith.cmpi eq, %arg0, %c1_i32 : i32
    %4 = arith.extui %3 : i1 to i32
    %c0_i32_1 = arith.constant 0 : i32
    %5 = arith.cmpi ne, %4, %c0_i32_1 : i32
    scf.if %5 {
      %c0_i32_2 = arith.constant 0 : i32
      %6 = arith.cmpi eq, %arg1, %c0_i32_2 : i32
      %7 = arith.extui %6 : i1 to i32
      %c0_i32_3 = arith.constant 0 : i32
      %8 = arith.cmpi ne, %7, %c0_i32_3 : i32
      scf.if %8 {
        %c0_12 = arith.constant 0 : index
        %c0_13 = arith.constant 0 : index
        %25 = vector.load %arg8[%c0_12, %c0_13] : memref<16x128xf32, #tpu.memory_space<vmem>>, vector<16x128xf32>
        %cst_14 = arith.constant dense<0.000000e+00> : vector<16xf32>
        %26 = vector.multi_reduction <add>, %25, %cst_14 [1] : vector<16x128xf32> to vector<16xf32>
        %27 = vector.shape_cast %26 : vector<16xf32> to vector<16x1xf32>
        %c0_15 = arith.constant 0 : index
        %c0_16 = arith.constant 0 : index
        %28 = vector.load %arg9[%c0_15, %c0_16] : memref<16x128xf32, #tpu.memory_space<vmem>>, vector<16x128xf32>
        %cst_17 = arith.constant dense<0.000000e+00> : vector<16xf32>
        %29 = vector.multi_reduction <add>, %28, %cst_17 [1] : vector<16x128xf32> to vector<16xf32>
        %30 = vector.shape_cast %29 : vector<16xf32> to vector<16x1xf32>
        %cst_18 = arith.constant 3.906250e-03 : f32
        %31 = vector.broadcast %cst_18 : f32 to vector<16x1xf32>
        %32 = arith.mulf %27, %31 : vector<16x1xf32>
        %cst_19 = arith.constant 3.906250e-03 : f32
        %33 = vector.broadcast %cst_19 : f32 to vector<16x1xf32>
        %34 = arith.mulf %30, %33 : vector<16x1xf32>
        %35 = arith.mulf %32, %32 : vector<16x1xf32>
        %36 = arith.subf %34, %35 : vector<16x1xf32>
        %cst_20 = arith.constant 0.000000e+00 : f32
        %37 = vector.broadcast %cst_20 : f32 to vector<16x1xf32>
        %38 = arith.maximumf %36, %37 : vector<16x1xf32>
        %c0_21 = arith.constant 0 : index
        %c0_22 = arith.constant 0 : index
        %39 = vector.load %arg4[%c0_21, %c0_22] : memref<16x1xf32, #tpu.memory_space<vmem>>, vector<16x1xf32>
        %cst_23 = arith.constant 9.99999974E-6 : f32
        %40 = vector.broadcast %cst_23 : f32 to vector<16x1xf32>
        %41 = arith.addf %38, %40 : vector<16x1xf32>
        %42 = math.rsqrt %41 : vector<16x1xf32>
        %43 = arith.mulf %39, %42 : vector<16x1xf32>
        %c0_24 = arith.constant 0 : index
        %c0_25 = arith.constant 0 : index
        %44 = vector.load %arg10[%c0_24, %c0_25] : memref<16x1xf32, #tpu.memory_space<vmem>>, vector<16x1xf32>
        tpu.vector_store %arg10[%c0_24, %c0_25], %43 {strides = array<i32>} : memref<16x1xf32, #tpu.memory_space<vmem>>, vector<16x1xf32>,
        %c0_26 = arith.constant 0 : index
        %c0_27 = arith.constant 0 : index
        %45 = vector.load %arg5[%c0_26, %c0_27] : memref<16x1xf32, #tpu.memory_space<vmem>>, vector<16x1xf32>
        %46 = arith.mulf %32, %43 : vector<16x1xf32>
        %47 = arith.subf %45, %46 : vector<16x1xf32>
        %c0_28 = arith.constant 0 : index
        %c0_29 = arith.constant 0 : index
        %48 = vector.load %arg11[%c0_28, %c0_29] : memref<16x1xf32, #tpu.memory_space<vmem>>, vector<16x1xf32>
        tpu.vector_store %arg11[%c0_28, %c0_29], %47 {strides = array<i32>} : memref<16x1xf32, #tpu.memory_space<vmem>>, vector<16x1xf32>,
      } else {
      }
      %9 = arith.index_cast %arg1 : i32 to index
      %c0 = arith.constant 0 : index
      %c0_4 = arith.constant 0 : index
      %10 = vector.load %arg7[%9, %c0, %c0_4] : memref<2x16x128xf32, #tpu.memory_space<vmem>>, vector<1x16x128xf32>
      %11 = vector.shape_cast %10 : vector<1x16x128xf32> to vector<16x128xf32>
      %c0_5 = arith.constant 0 : index
      %c0_6 = arith.constant 0 : index
      %12 = vector.load %arg10[%c0_5, %c0_6] : memref<16x1xf32, #tpu.memory_space<vmem>>, vector<16x1xf32>
      %13 = vector.broadcast %12 : vector<16x1xf32> to vector<16x128xf32>
      %14 = arith.mulf %11, %13 : vector<16x128xf32>
      %c0_7 = arith.constant 0 : index
      %c0_8 = arith.constant 0 : index
      %15 = vector.load %arg11[%c0_7, %c0_8] : memref<16x1xf32, #tpu.memory_space<vmem>>, vector<16x1xf32>
      %16 = vector.broadcast %15 : vector<16x1xf32> to vector<16x128xf32>
      %17 = arith.addf %14, %16 : vector<16x128xf32>
      %cst = arith.constant 0.000000e+00 : f32
      %18 = vector.broadcast %cst : f32 to vector<16x128xf32>
      %19 = arith.cmpf oge, %17, %18 : vector<16x128xf32>
      %cst_9 = arith.constant 0.00999999977 : f32
      %20 = vector.broadcast %cst_9 : f32 to vector<16x128xf32>
      %21 = arith.mulf %20, %17 : vector<16x128xf32>
      %22 = arith.select %19, %17, %21 : vector<16x128xi1>, vector<16x128xf32>
      %23 = arith.truncf %22 : vector<16x128xf32> to vector<16x128xbf16>
      %c0_10 = arith.constant 0 : index
      %c0_11 = arith.constant 0 : index
      %24 = vector.load %arg6[%c0_10, %c0_11] : memref<16x128xbf16, #tpu.memory_space<vmem>>, vector<16x128xbf16>
      tpu.vector_store %arg6[%c0_10, %c0_11], %23 {strides = array<i32>} : memref<16x128xbf16, #tpu.memory_space<vmem>>, vector<16x128xbf16>,
    } else {
    }
    return
  }
  func.func @transform_0(%arg0: i32, %arg1: i32) -> (i32, i32) {
    %c0_i32 = arith.constant 0 : i32
    %c0_i32_0 = arith.constant 0 : i32
    %c0_i32_1 = arith.constant 0 : i32
    return %c0_i32, %c0_i32_0 : i32, i32
  }
  func.func @transform_1(%arg0: i32, %arg1: i32) -> (i32, i32) {
    %c1_i32 = arith.constant 1 : i32
    %0 = arith.subi %c1_i32, %arg0 : i32
    %1 = arith.muli %arg1, %0 : i32
    %c1_i32_0 = arith.constant 1 : i32
    %2 = arith.muli %c1_i32_0, %arg0 : i32
    %3 = arith.addi %1, %2 : i32
    %c0_i32 = arith.constant 0 : i32
    %c0_i32_1 = arith.constant 0 : i32
    return %c0_i32, %3 : i32, i32
  }
  func.func @transform_2(%arg0: i32, %arg1: i32) -> (i32, i32) {
    %c0_i32 = arith.constant 0 : i32
    %c0_i32_0 = arith.constant 0 : i32
    %c0_i32_1 = arith.constant 0 : i32
    return %c0_i32, %c0_i32_0 : i32, i32
  }
  func.func @transform_3(%arg0: i32, %arg1: i32) -> (i32, i32) {
    %c0_i32 = arith.constant 0 : i32
    %c0_i32_0 = arith.constant 0 : i32
    %c0_i32_1 = arith.constant 0 : i32
    return %c0_i32, %c0_i32_0 : i32, i32
  }
  func.func @transform_4(%arg0: i32, %arg1: i32) -> (i32, i32) {
    %0 = arith.muli %arg1, %arg0 : i32
    %c0_i32 = arith.constant 0 : i32
    %c0_i32_0 = arith.constant 0 : i32
    return %c0_i32, %0 : i32, i32
  }
}

module attributes {stable_mosaic.version = 11 : i64} {
  func.func @_conv_bn_lrelu_kernel(%arg0: i32, %arg1: i32, %arg2: memref<32x256xbf16, #tpu.memory_space<vmem>>, %arg3: memref<256x128xbf16, #tpu.memory_space<vmem>>, %arg4: memref<32x1xf32, #tpu.memory_space<vmem>>, %arg5: memref<32x1xf32, #tpu.memory_space<vmem>>, %arg6: memref<32x128xbf16, #tpu.memory_space<vmem>>, %arg7: memref<1x32x128xf32, #tpu.memory_space<vmem>>, %arg8: memref<32x128xf32, #tpu.memory_space<vmem>>, %arg9: memref<32x128xf32, #tpu.memory_space<vmem>>, %arg10: memref<32x1xf32, #tpu.memory_space<vmem>>, %arg11: memref<32x1xf32, #tpu.memory_space<vmem>>) attributes {dimension_semantics = [#tpu.dimension_semantics<arbitrary>, #tpu.dimension_semantics<arbitrary>], iteration_bounds = array<i64: 2, 1>, scalar_prefetch = 0 : i64, scratch_operands = 5 : i64, tpu.core_type = #tpu.core_type<tc>, window_params = [{pipeline_mode = #tpu.pipeline_mode<synchronous>, transform_indices = @transform_0, window_bounds = array<i64: 32, 256>}, {transform_indices = @transform_1, window_bounds = array<i64: 256, 128>}, {pipeline_mode = #tpu.pipeline_mode<synchronous>, transform_indices = @transform_2, window_bounds = array<i64: 32, 1>}, {pipeline_mode = #tpu.pipeline_mode<synchronous>, transform_indices = @transform_3, window_bounds = array<i64: 32, 1>}, {transform_indices = @transform_4, window_bounds = array<i64: 32, 128>}]} {
    %c0_i32 = arith.constant 0 : i32
    %0 = arith.cmpi eq, %arg0, %c0_i32 : i32
    %1 = arith.extui %0 : i1 to i32
    %c0_i32_0 = arith.constant 0 : i32
    %2 = arith.cmpi ne, %1, %c0_i32_0 : i32
    scf.if %2 {
      %c0_i32_2 = arith.constant 0 : i32
      %6 = arith.cmpi eq, %arg1, %c0_i32_2 : i32
      %7 = arith.extui %6 : i1 to i32
      %c0_i32_3 = arith.constant 0 : i32
      %8 = arith.cmpi ne, %7, %c0_i32_3 : i32
      scf.if %8 {
        %cst_17 = arith.constant 0.000000e+00 : f32
        %23 = vector.broadcast %cst_17 : f32 to vector<32x128xf32>
        %c0_18 = arith.constant 0 : index
        %c0_19 = arith.constant 0 : index
        %24 = vector.load %arg8[%c0_18, %c0_19] : memref<32x128xf32, #tpu.memory_space<vmem>>, vector<32x128xf32>
        tpu.vector_store %arg8[%c0_18, %c0_19], %23 {strides = array<i32>} : memref<32x128xf32, #tpu.memory_space<vmem>>, vector<32x128xf32>,
        %cst_20 = arith.constant 0.000000e+00 : f32
        %25 = vector.broadcast %cst_20 : f32 to vector<32x128xf32>
        %c0_21 = arith.constant 0 : index
        %c0_22 = arith.constant 0 : index
        %26 = vector.load %arg9[%c0_21, %c0_22] : memref<32x128xf32, #tpu.memory_space<vmem>>, vector<32x128xf32>
        tpu.vector_store %arg9[%c0_21, %c0_22], %25 {strides = array<i32>} : memref<32x128xf32, #tpu.memory_space<vmem>>, vector<32x128xf32>,
      } else {
      }
      %c0 = arith.constant 0 : index
      %c0_4 = arith.constant 0 : index
      %9 = vector.load %arg2[%c0, %c0_4] : memref<32x256xbf16, #tpu.memory_space<vmem>>, vector<32x256xbf16>
      %c0_5 = arith.constant 0 : index
      %c0_6 = arith.constant 0 : index
      %10 = vector.load %arg3[%c0_5, %c0_6] : memref<256x128xbf16, #tpu.memory_space<vmem>>, vector<256x128xbf16>
      %cst = arith.constant dense<0.000000e+00> : vector<32x128xf32>
      %11 = tpu.matmul %9, %10, %cst {dimension_numbers = #tpu.dot_dimension_numbers<[1], [0], [0], [1], [0, 0, 1, 1], [], []>} : vector<32x256xbf16>, vector<256x128xbf16>, vector<32x128xf32> -> vector<32x128xf32>
      %12 = arith.index_cast %arg1 : i32 to index
      %c0_7 = arith.constant 0 : index
      %c0_8 = arith.constant 0 : index
      %13 = vector.load %arg7[%12, %c0_7, %c0_8] : memref<1x32x128xf32, #tpu.memory_space<vmem>>, vector<1x32x128xf32>
      %14 = vector.shape_cast %13 : vector<1x32x128xf32> to vector<32x128xf32>
      %15 = vector.shape_cast %11 : vector<32x128xf32> to vector<1x32x128xf32>
      tpu.vector_store %arg7[%12, %c0_7, %c0_8], %15 {strides = array<i32>} : memref<1x32x128xf32, #tpu.memory_space<vmem>>, vector<1x32x128xf32>,
      %16 = arith.mulf %11, %11 : vector<32x128xf32>
      %c0_9 = arith.constant 0 : index
      %c0_10 = arith.constant 0 : index
      %17 = vector.load %arg8[%c0_9, %c0_10] : memref<32x128xf32, #tpu.memory_space<vmem>>, vector<32x128xf32>
      %18 = arith.addf %17, %11 : vector<32x128xf32>
      %c0_11 = arith.constant 0 : index
      %c0_12 = arith.constant 0 : index
      %19 = vector.load %arg8[%c0_11, %c0_12] : memref<32x128xf32, #tpu.memory_space<vmem>>, vector<32x128xf32>
      tpu.vector_store %arg8[%c0_11, %c0_12], %18 {strides = array<i32>} : memref<32x128xf32, #tpu.memory_space<vmem>>, vector<32x128xf32>,
      %c0_13 = arith.constant 0 : index
      %c0_14 = arith.constant 0 : index
      %20 = vector.load %arg9[%c0_13, %c0_14] : memref<32x128xf32, #tpu.memory_space<vmem>>, vector<32x128xf32>
      %21 = arith.addf %20, %16 : vector<32x128xf32>
      %c0_15 = arith.constant 0 : index
      %c0_16 = arith.constant 0 : index
      %22 = vector.load %arg9[%c0_15, %c0_16] : memref<32x128xf32, #tpu.memory_space<vmem>>, vector<32x128xf32>
      tpu.vector_store %arg9[%c0_15, %c0_16], %21 {strides = array<i32>} : memref<32x128xf32, #tpu.memory_space<vmem>>, vector<32x128xf32>,
    } else {
    }
    %c1_i32 = arith.constant 1 : i32
    %3 = arith.cmpi eq, %arg0, %c1_i32 : i32
    %4 = arith.extui %3 : i1 to i32
    %c0_i32_1 = arith.constant 0 : i32
    %5 = arith.cmpi ne, %4, %c0_i32_1 : i32
    scf.if %5 {
      %c0_i32_2 = arith.constant 0 : i32
      %6 = arith.cmpi eq, %arg1, %c0_i32_2 : i32
      %7 = arith.extui %6 : i1 to i32
      %c0_i32_3 = arith.constant 0 : i32
      %8 = arith.cmpi ne, %7, %c0_i32_3 : i32
      scf.if %8 {
        %c0_12 = arith.constant 0 : index
        %c0_13 = arith.constant 0 : index
        %25 = vector.load %arg8[%c0_12, %c0_13] : memref<32x128xf32, #tpu.memory_space<vmem>>, vector<32x128xf32>
        %cst_14 = arith.constant dense<0.000000e+00> : vector<32xf32>
        %26 = vector.multi_reduction <add>, %25, %cst_14 [1] : vector<32x128xf32> to vector<32xf32>
        %27 = vector.shape_cast %26 : vector<32xf32> to vector<32x1xf32>
        %c0_15 = arith.constant 0 : index
        %c0_16 = arith.constant 0 : index
        %28 = vector.load %arg9[%c0_15, %c0_16] : memref<32x128xf32, #tpu.memory_space<vmem>>, vector<32x128xf32>
        %cst_17 = arith.constant dense<0.000000e+00> : vector<32xf32>
        %29 = vector.multi_reduction <add>, %28, %cst_17 [1] : vector<32x128xf32> to vector<32xf32>
        %30 = vector.shape_cast %29 : vector<32xf32> to vector<32x1xf32>
        %cst_18 = arith.constant 1.562500e-02 : f32
        %31 = vector.broadcast %cst_18 : f32 to vector<32x1xf32>
        %32 = arith.mulf %27, %31 : vector<32x1xf32>
        %cst_19 = arith.constant 1.562500e-02 : f32
        %33 = vector.broadcast %cst_19 : f32 to vector<32x1xf32>
        %34 = arith.mulf %30, %33 : vector<32x1xf32>
        %35 = arith.mulf %32, %32 : vector<32x1xf32>
        %36 = arith.subf %34, %35 : vector<32x1xf32>
        %cst_20 = arith.constant 0.000000e+00 : f32
        %37 = vector.broadcast %cst_20 : f32 to vector<32x1xf32>
        %38 = arith.maximumf %36, %37 : vector<32x1xf32>
        %c0_21 = arith.constant 0 : index
        %c0_22 = arith.constant 0 : index
        %39 = vector.load %arg4[%c0_21, %c0_22] : memref<32x1xf32, #tpu.memory_space<vmem>>, vector<32x1xf32>
        %cst_23 = arith.constant 9.99999974E-6 : f32
        %40 = vector.broadcast %cst_23 : f32 to vector<32x1xf32>
        %41 = arith.addf %38, %40 : vector<32x1xf32>
        %42 = math.rsqrt %41 : vector<32x1xf32>
        %43 = arith.mulf %39, %42 : vector<32x1xf32>
        %c0_24 = arith.constant 0 : index
        %c0_25 = arith.constant 0 : index
        %44 = vector.load %arg10[%c0_24, %c0_25] : memref<32x1xf32, #tpu.memory_space<vmem>>, vector<32x1xf32>
        tpu.vector_store %arg10[%c0_24, %c0_25], %43 {strides = array<i32>} : memref<32x1xf32, #tpu.memory_space<vmem>>, vector<32x1xf32>,
        %c0_26 = arith.constant 0 : index
        %c0_27 = arith.constant 0 : index
        %45 = vector.load %arg5[%c0_26, %c0_27] : memref<32x1xf32, #tpu.memory_space<vmem>>, vector<32x1xf32>
        %46 = arith.mulf %32, %43 : vector<32x1xf32>
        %47 = arith.subf %45, %46 : vector<32x1xf32>
        %c0_28 = arith.constant 0 : index
        %c0_29 = arith.constant 0 : index
        %48 = vector.load %arg11[%c0_28, %c0_29] : memref<32x1xf32, #tpu.memory_space<vmem>>, vector<32x1xf32>
        tpu.vector_store %arg11[%c0_28, %c0_29], %47 {strides = array<i32>} : memref<32x1xf32, #tpu.memory_space<vmem>>, vector<32x1xf32>,
      } else {
      }
      %9 = arith.index_cast %arg1 : i32 to index
      %c0 = arith.constant 0 : index
      %c0_4 = arith.constant 0 : index
      %10 = vector.load %arg7[%9, %c0, %c0_4] : memref<1x32x128xf32, #tpu.memory_space<vmem>>, vector<1x32x128xf32>
      %11 = vector.shape_cast %10 : vector<1x32x128xf32> to vector<32x128xf32>
      %c0_5 = arith.constant 0 : index
      %c0_6 = arith.constant 0 : index
      %12 = vector.load %arg10[%c0_5, %c0_6] : memref<32x1xf32, #tpu.memory_space<vmem>>, vector<32x1xf32>
      %13 = vector.broadcast %12 : vector<32x1xf32> to vector<32x128xf32>
      %14 = arith.mulf %11, %13 : vector<32x128xf32>
      %c0_7 = arith.constant 0 : index
      %c0_8 = arith.constant 0 : index
      %15 = vector.load %arg11[%c0_7, %c0_8] : memref<32x1xf32, #tpu.memory_space<vmem>>, vector<32x1xf32>
      %16 = vector.broadcast %15 : vector<32x1xf32> to vector<32x128xf32>
      %17 = arith.addf %14, %16 : vector<32x128xf32>
      %cst = arith.constant 0.000000e+00 : f32
      %18 = vector.broadcast %cst : f32 to vector<32x128xf32>
      %19 = arith.cmpf oge, %17, %18 : vector<32x128xf32>
      %cst_9 = arith.constant 0.00999999977 : f32
      %20 = vector.broadcast %cst_9 : f32 to vector<32x128xf32>
      %21 = arith.mulf %20, %17 : vector<32x128xf32>
      %22 = arith.select %19, %17, %21 : vector<32x128xi1>, vector<32x128xf32>
      %23 = arith.truncf %22 : vector<32x128xf32> to vector<32x128xbf16>
      %c0_10 = arith.constant 0 : index
      %c0_11 = arith.constant 0 : index
      %24 = vector.load %arg6[%c0_10, %c0_11] : memref<32x128xbf16, #tpu.memory_space<vmem>>, vector<32x128xbf16>
      tpu.vector_store %arg6[%c0_10, %c0_11], %23 {strides = array<i32>} : memref<32x128xbf16, #tpu.memory_space<vmem>>, vector<32x128xbf16>,
    } else {
    }
    return
  }
  func.func @transform_0(%arg0: i32, %arg1: i32) -> (i32, i32) {
    %c0_i32 = arith.constant 0 : i32
    %c0_i32_0 = arith.constant 0 : i32
    %c0_i32_1 = arith.constant 0 : i32
    return %c0_i32, %c0_i32_0 : i32, i32
  }
  func.func @transform_1(%arg0: i32, %arg1: i32) -> (i32, i32) {
    %c1_i32 = arith.constant 1 : i32
    %0 = arith.subi %c1_i32, %arg0 : i32
    %1 = arith.muli %arg1, %0 : i32
    %c0_i32 = arith.constant 0 : i32
    %2 = arith.muli %c0_i32, %arg0 : i32
    %3 = arith.addi %1, %2 : i32
    %c0_i32_0 = arith.constant 0 : i32
    %c0_i32_1 = arith.constant 0 : i32
    return %c0_i32_0, %3 : i32, i32
  }
  func.func @transform_2(%arg0: i32, %arg1: i32) -> (i32, i32) {
    %c0_i32 = arith.constant 0 : i32
    %c0_i32_0 = arith.constant 0 : i32
    %c0_i32_1 = arith.constant 0 : i32
    return %c0_i32, %c0_i32_0 : i32, i32
  }
  func.func @transform_3(%arg0: i32, %arg1: i32) -> (i32, i32) {
    %c0_i32 = arith.constant 0 : i32
    %c0_i32_0 = arith.constant 0 : i32
    %c0_i32_1 = arith.constant 0 : i32
    return %c0_i32, %c0_i32_0 : i32, i32
  }
  func.func @transform_4(%arg0: i32, %arg1: i32) -> (i32, i32) {
    %0 = arith.muli %arg1, %arg0 : i32
    %c0_i32 = arith.constant 0 : i32
    %c0_i32_0 = arith.constant 0 : i32
    return %c0_i32, %0 : i32, i32
  }
}

</mosaic_0001>

<bundles_post_ra>
// kernel: discriminator_forward.3
= control target key start
LH: loop header
LB: loop body
LE: loop exit
PB: predicated region body
PF: predicated region fallthrough
CT: control target
= control target key end

     0   :  { %s435_s9 = smov 0   ;;  %s437_s10 = smov 0   ;;  %s492_s0 = inlined_call_operand.vmem [shape: bf16[8,48], index: 0, kind: input, shape index: {}]   ;;  %s493_s1 = inlined_call_operand.vmem [shape: bf16[48,1024], index: 1, kind: input, shape index: {}]   ;;  %s494_s2 = inlined_call_operand.vmem [shape: f32[8,1024], index: 2, kind: output, shape index: {}]  }
   0x1   :  { %s439_s11 = smov 0  }
   0x2 LB: > { %s336_s12 = sadd.s32 4294967295, %s416_s11   ;;  %s452_s13 = sadd.s32 1, %s416_s11   ;;  %s416_s11 = sphi %s439_s11, %s497_s11   ;;  %s412_s10 = sphi %s437_s10, %s496_s10   ;;  %s408_s9 = sphi %s435_s9, %s495_s9  }
   0x3   : > { %s37_s14 = ssub.s32 %s416_s11, %s452_s13  ;;  %s40_s15 = sadd.s32 1, %s412_s10 }
   0x4   : > { %p38_p0 = scmp.eq.s32.totalorder %s37_s14, 0  ;;  %p47_p1 = scmp.ne.s32.totalorder %s412_s10, %s408_s9 }
   0x5   : > { %p48_p2 = scmp.eq.s32.totalorder %s416_s11, 0  ;;  %p339_p4 = scmp.ge.s32.totalorder %s416_s11, 8 }
   0x6   : > { %s461_s16 = scalar_select %p38_p0, %s412_s10, %s40_s15  }
   0x7   : > { %p49_p3 = por %p48_p2, %p47_p1  ;;  %102 = sbr.rel (%p339_p4) target bundleno = 24 (0x18), region = 20 }
   0xe   : > { %105 = sbr.rel (!%p49_p3) target bundleno = 24 (0x18), region = 24  ;;  %s107_s17 = sand.u32 (%p49_p3), 1, %s412_s10  }
   0xf   : > { %s340_s18 = sshll.u32 (%p49_p3), %s416_s11, 2  ;;  %s363_s19 = smul.u32 (%p49_p3), 24, %s107_s17 }
  0x10   : > { %s111_s22 = scalar_lea.vmem (%p49_p3), %s493_s1, %s340_s18 }
  0x11   : > { %v127_v0 = vld [vmem:[%s111_s22] sm:$0xf] (%p49_p3)  ;;  %s109_s23 = scalar_lea.vmem (%p49_p3), [#allocation2], %s363_s19 }
  0x12   : > { %v129_v1 = vld [vmem:[%s111_s22 + $0x20] sm:$0xf] (%p49_p3)  ;;  %128 = vst [vmem:[%s109_s23] sm:$0xf] (%p49_p3), %v127_v0 }
  0x13   : > { %v131_v2 = vld [vmem:[%s111_s22 + $0x40] sm:$0xf] (%p49_p3)  ;;  %130 = vst [vmem:[%s109_s23 + $0x4] sm:$0xf] (%p49_p3), %v129_v1 }
  0x14   : > { %v133_v3 = vld [vmem:[%s111_s22 + $0x60] sm:$0xf] (%p49_p3)  ;;  %132 = vst [vmem:[%s109_s23 + $0x8] sm:$0xf] (%p49_p3), %v131_v2 }
  0x15   : > { %v135_v4 = vld [vmem:[%s111_s22 + $0x80] sm:$0xf]  ;;  %134 = vst [vmem:[%s109_s23 + $0xc] sm:$0xf] %v133_v3 }
  0x16   : > { %136 = vst [vmem:[%s109_s23 + $0x10] sm:$0xf] %v135_v4  ;;  %v137_v5 = vld [vmem:[%s111_s22 + $0xa0] sm:$0xf] }
  0x17   : > { %138 = vst [vmem:[%s109_s23 + $0x14] sm:$0xf] %v137_v5 }
  0x18 PF: > { %p341_p5 = scmp.ge.s32.totalorder %s416_s11, 1  ;;  %p172_p6 = scmp.lt.s32.totalorder %s416_s11, 9 }
  0x1a   : > { %p173_p7 = pnand %p341_p5, %p172_p6 }
  0x1b   : > { %s179_s24 = sand.u32 (!%p173_p7), 1, %s408_s9   ;;  %v418_v6 = vmov (!%p173_p7), 0.0   ;;  %vm419_vm0 = vmmov (!%p173_p7), 0   ;;  %v204_v10 = vld [vmem:[%s492_s0] sm:$0xf] (!%p173_p7)  ;;  %vm229_vm1 = vcmask (!%p173_p7), 392192  }
  0x1c   : > { %176 = sbr.rel (%p173_p7) target bundleno = 260 (0x104), region = 65  ;;  %353 = vmatprep.subr.bf16.mxu0 (!%p173_p7), %v418_v6  ;;  %359 = vmatprep.mubr.msk.bf16.mxu0 (!%p173_p7), %vm419_vm0, %v418_v6  ;;  %p199_p8 = scmp.lt.s32.totalorder (!%p173_p7), %s336_s12, 7 }
  0x1d   : > { %s364_s25 = smul.u32 (!%p173_p7), 24, %s179_s24 }
  0x1f   : > { %s181_s26 = scalar_lea.vmem (!%p173_p7), [#allocation2], %s364_s25 }
  0x20   : > { %v391_v7 = vld [vmem:[%s181_s26] sm:$0xff] (!%p173_p7)   ;;  %v392_v8 = vld [vmem:[%s181_s26 + $0x8] sm:$0xff] (!%p173_p7)   ;;  %v393_v9 = vld [vmem:[%s181_s26 + $0x10] sm:$0xff] (!%p173_p7)  }
  0x21   : > { %354 = vmatpush3.bf16.msra.mxu0 (!%p173_p7), %v391_v7 }
  0x22   : > { %355 = vmatprep.subr.bf16.mxu0 (!%p173_p7), %v418_v6 }
  0x23   : > { %s499_s12 = smov (!%p199_p8, %s336_s12), 7 }
  0x24   : > { %s342_s29 = sshll.u32 %s499_s12, 3 }
  0x25   : > { %356 = vmatpush3.bf16.msra.mxu0 %v392_v8  ;;  %s202_s4 = scalar_lea.vmem %s494_s2, %s342_s29 }
  0x26   : > { %357 = vmatprep.subr.bf16.mxu0 %v418_v6 }
  0x29   : > { %358 = vmatpush3.bf16.msra.mxu0 %v393_v9 }
  0x2c   : > { %360 = vmatmul.mubr.msk.bf16.vlgmr.msra.gmra.mrb[0].mxu0 %vm229_vm1, %v204_v10 }
  0xff   : > { %v267_v11 = vpop.f32.mrb[0].mxu0 }
 0x100   : > { %vm273_vm2 = vcmp.ge.f32.partialorder %v267_v11, 0.0  ;;  %v274_v12 = vmul.f32 0.01, %v267_v11  ;;  %v361_v13 = vpop.f32.mrb[1].mxu0 }
 0x101   : > { %v270_v14 = vpop.f32.mrb[2].mxu0 }
 0x102   : > { %v275_v15 = vsel %vm273_vm2, %v267_v11, %v274_v12  ;;  %v362_v16 = vpop.f32.mrb[3].mxu0 }
 0x103   : > { %276 = vst [vmem:[%s202_s4] sm:$0xff] %v275_v15 }
 0x104 PF: > { %p9_p9 = scmp.ge.s32.totalorder %s452_s13, 10   ;;  %s495_s9 = smov %s412_s10 }
 0x105   : > { %s496_s10 = smov %s461_s16  ;;  %s497_s11 = smov %s452_s13 }
 0x106   :  { %11 = sbr.rel (!%p9_p9) target bundleno = 2 (0x2), region = 104 }

// kernel: discriminator_forward.4
= control target key start
LH: loop header
LB: loop body
LE: loop exit
PB: predicated region body
PF: predicated region fallthrough
CT: control target
= control target key end

     0   :  { %s945_s15 = smov 0   ;;  %s947_s16 = smov 0   ;;  %s1128_s0 = inlined_call_operand.vmem [shape: bf16[16,128], index: 0, kind: input, shape index: {}]   ;;  %s1129_s1 = inlined_call_operand.vmem [shape: bf16[128,256], index: 1, kind: input, shape index: {}]   ;;  %s1130_s2 = inlined_call_operand.vmem [shape: f32[16,1], index: 2, kind: input, shape index: {}]   ;;  %s1131_s3 = inlined_call_operand.vmem [shape: f32[16,1], index: 3, kind: input, shape index: {}]   ;;  %s1132_s4 = inlined_call_operand.vmem [shape: bf16[16,256], index: 4, kind: output, shape index: {}]  }
   0x1   :  { %s949_s17 = smov 0   ;;  %s951_s18 = smov 0  }
   0x2   :  { %s953_s19 = smov 0   ;;  %s955_s20 = smov 0  }
   0x3   :  { %s957_s21 = smov 0   ;;  %s959_s22 = smov 0  }
   0x4   :  { %s961_s23 = smov 0  }
   0x5 LB: > { %s687_s24 = sadd.s32 4294967295, %s914_s23   ;;  %s23_s25 = sadd.s32 1, %s906_s21  ;;  %s914_s23 = sphi %s961_s23, %s14_s23   ;;  %s910_s22 = sphi %s959_s22, %s1142_s22   ;;  %s906_s21 = sphi %s957_s21, %s1141_s21   ;;  %s902_s20 = sphi %s955_s20, %s1140_s20   ;;  %s898_s19 = sphi %s953_s19, %s1139_s19   ;;  %s894_s18 = sphi %s951_s18, %s1138_s18   ;;  %s890_s17 = sphi %s949_s17, %s1137_s17   ;;  %s886_s16 = sphi %s947_s16, %s1136_s16   ;;  %s882_s15 = sphi %s945_s15, %s1135_s15  }
   0x6   : > { %p24_p0 = scmp.ge.s32.totalorder %s23_s25, 2  ;;  %s26_s26 = sadd.s32 1, %s910_s22 }
   0x7   : > { %s51_s27 = ssub.s32 1, %s910_s22  ;;  %s60_s28 = sadd.s32 1, %s894_s18 }
   0x8   : > { %s1144_s25 = smov (%p24_p0, %s23_s25), 0  ;;  %s1146_s26 = smov (!%p24_p0, %s26_s26), %s910_s22 }
   0x9   : > { %s52_s29 = smul.u32 %s906_s21, %s51_s27  ;;  %p67_p1 = scmp.ne.s32.totalorder %s894_s18, %s890_s17 }
   0xa   : > { %p28_p2 = scmp.ge.s32.totalorder %s1146_s26, 2  ;;  %p68_p3 = scmp.eq.s32.totalorder %s914_s23, 0 }
   0xb   : > { %s53_s30 = sadd.s32 %s910_s22, %s52_s29  ;;  %s125_s5 = smul.u32 %s906_s21, %s910_s22 }
   0xc   : > { %s1148_s26 = smov (%p28_p2, %s1146_s26), 0  ;;  %p1007_p4 = por %p68_p3, %p67_p1 }
   0xd   : > { %s130_s7 = sadd.s32 1, %s886_s16  ;;  %s54_s8 = ssub.s32 1, %s1148_s26 }
   0xe   : > { %s126_s9 = smul.u32 %s1148_s26, %s1144_s25  ;;  %p140_p5 = scmp.ne.s32.totalorder %s886_s16, %s882_s15 }
   0xf   : > { %s55_s10 = smul.u32 %s54_s8, %s1144_s25  ;;  %p141_p6 = scmp.eq.s32.totalorder %s687_s24, 3 }
  0x10   : > { %s127_s11 = ssub.s32 %s125_s5, %s126_s9  ;;  %p690_p10 = scmp.ge.s32.totalorder %s914_s23, 4 }
  0x11   : > { %s56_s12 = sadd.s32 %s55_s10, %s1148_s26  ;;  %p128_p7 = scmp.eq.s32.totalorder %s127_s11, 0 }
  0x12   : > { %s57_s13 = ssub.s32 %s53_s30, %s56_s12  ;;  %p1019_p8 = por %p141_p6, %p140_p5 }
  0x13   : > { %p58_p9 = scmp.eq.s32.totalorder %s57_s13, 0  ;;  %172 = sbr.rel (%p690_p10) target bundleno = 40 (0x28), region = 28 }
  0x14   : > { %s1024_s27 = scalar_select %p128_p7, %s886_s16, %s130_s7  }
  0x15   : > { %s1027_s29 = scalar_select %p58_p9, %s894_s18, %s60_s28  }
  0x1a   : > { %175 = sbr.rel (!%p1007_p4) target bundleno = 40 (0x28), region = 32  ;;  %s177_s24 = sand.u32 (%p1007_p4), 1, %s894_s18  }
  0x1b   : > { %s692_s5 = sshll.u32 (%p1007_p4), %s53_s30, 2  ;;  %s691_s8 = sshll.u32 (%p1007_p4), %s177_s24, 6 }
  0x1c   : > { %s1036_s11 = scalar_lea.vmem (%p1007_p4), %s1129_s1, %s692_s5  ;;  %s179_s28 = scalar_lea.vmem (%p1007_p4), [#allocation7], %s691_s8 }
  0x1d   : > { %v200_v0 = vld [vmem:[%s1036_s11] sm:$0xf] (%p1007_p4)  ;;  %v202_v1 = vld [vmem:[%s1036_s11 + $0x8] sm:$0xf] (%p1007_p4)  ;;  %v204_v2 = vld [vmem:[%s1036_s11 + $0x10] sm:$0xf] (%p1007_p4) }
  0x1e   : > { %201 = vst [vmem:[%s179_s28] sm:$0xf] (%p1007_p4), %v200_v0  ;;  %203 = vst [vmem:[%s179_s28 + $0x4] sm:$0xf] (%p1007_p4), %v202_v1  ;;  %v206_v3 = vld [vmem:[%s1036_s11 + $0x18] sm:$0xf] (%p1007_p4) }
  0x1f   : > { %v208_v4 = vld [vmem:[%s1036_s11 + $0x20] sm:$0xf] (%p1007_p4)  ;;  %205 = vst [vmem:[%s179_s28 + $0x8] sm:$0xf] (%p1007_p4), %v204_v2  ;;  %207 = vst [vmem:[%s179_s28 + $0xc] sm:$0xf] (%p1007_p4), %v206_v3 }
  0x20   : > { %209 = vst [vmem:[%s179_s28 + $0x10] sm:$0xf] (%p1007_p4), %v208_v4  ;;  %v210_v5 = vld [vmem:[%s1036_s11 + $0x28] sm:$0xf] (%p1007_p4)  ;;  %v212_v6 = vld [vmem:[%s1036_s11 + $0x30] sm:$0xf] (%p1007_p4) }
  0x21   : > { %v214_v7 = vld [vmem:[%s1036_s11 + $0x38] sm:$0xf]  ;;  %211 = vst [vmem:[%s179_s28 + $0x14] sm:$0xf] %v210_v5  ;;  %213 = vst [vmem:[%s179_s28 + $0x18] sm:$0xf] %v212_v6 }
  0x22   : > { %215 = vst [vmem:[%s179_s28 + $0x1c] sm:$0xf] %v214_v7  ;;  %v216_v8 = vld [vmem:[%s1036_s11 + $0x40] sm:$0xf]  ;;  %v218_v9 = vld [vmem:[%s1036_s11 + $0x48] sm:$0xf] }
  0x23   : > { %v220_v10 = vld [vmem:[%s1036_s11 + $0x50] sm:$0xf]  ;;  %217 = vst [vmem:[%s179_s28 + $0x20] sm:$0xf] %v216_v8  ;;  %219 = vst [vmem:[%s179_s28 + $0x24] sm:$0xf] %v218_v9 }
  0x24   : > { %221 = vst [vmem:[%s179_s28 + $0x28] sm:$0xf] %v220_v10  ;;  %v222_v11 = vld [vmem:[%s1036_s11 + $0x58] sm:$0xf]  ;;  %v224_v12 = vld [vmem:[%s1036_s11 + $0x60] sm:$0xf] }
  0x25   : > { %v226_v13 = vld [vmem:[%s1036_s11 + $0x68] sm:$0xf]  ;;  %223 = vst [vmem:[%s179_s28 + $0x2c] sm:$0xf] %v222_v11  ;;  %225 = vst [vmem:[%s179_s28 + $0x30] sm:$0xf] %v224_v12 }
  0x26   : > { %227 = vst [vmem:[%s179_s28 + $0x34] sm:$0xf] %v226_v13  ;;  %v228_v14 = vld [vmem:[%s1036_s11 + $0x70] sm:$0xf]  ;;  %v230_v15 = vld [vmem:[%s1036_s11 + $0x78] sm:$0xf] }
  0x27   : > { %229 = vst [vmem:[%s179_s28 + $0x38] sm:$0xf] %v228_v14  ;;  %231 = vst [vmem:[%s179_s28 + $0x3c] sm:$0xf] %v230_v15 }
  0x28 PF: > { %p693_p11 = scmp.ge.s32.totalorder %s914_s23, 1  ;;  %p285_p12 = scmp.lt.s32.totalorder %s914_s23, 5 }
  0x2a   : > { %p286_p13 = pnand %p693_p11, %p285_p12 }
  0x2b   : > { %s292_s30 = sand.u32 (!%p286_p13), 1, %s890_s17   ;;  %s313_s6 = sand.u32 (!%p286_p13), 1, %s882_s15  }
  0x2c   : > { %289 = sbr.rel (%p286_p13) target bundleno = 653 (0x28d), region = 73  ;;  %s694_s7 = sshll.u32 (!%p286_p13), %s292_s30, 6 }
  0x2d   : > { %s695_s12 = sshll.u32 (!%p286_p13), %s313_s6, 3  ;;  %s1058_s13 = scalar_lea.vmem (!%p286_p13), [#allocation7], %s694_s7 }
  0x2e   : > { %s1060_s24 = scalar_lea.vmem (!%p286_p13), [#allocation8], %s695_s12  ;;  %p696_p0 = scmp.ne.s32.totalorder (!%p286_p13), %s902_s20, 0 }
  0x33   : > { %324 = sbr.rel (%p696_p0) target bundleno = 317 (0x13d), region = 81  ;;  %p697_p1 = scmp.ne.s32.totalorder (!%p696_p0), %s898_s19, 0 }
  0x3a   : > { %328 = sbr.rel (%p697_p1) target bundleno = 65 (0x41), region = 85  ;;  %v916_v16 = vmov (!%p697_p1), 0.0  }
  0x3b   : > { %329 = vst [vmem:[#allocation3] sm:$0xff] (!%p697_p1), %v916_v16  ;;  %330 = vst [vmem:[#allocation3 + $0x8] sm:$0xff] (!%p697_p1), %v916_v16 }
  0x3c   : > { %331 = vst [vmem:[#allocation4] sm:$0xff] (!%p697_p1), %v916_v16  ;;  %332 = vst [vmem:[#allocation4 + $0x8] sm:$0xff] (!%p697_p1), %v916_v16 }
  0x41 PF: > { %v829_v17 = vld [vmem:[%s1058_s13] sm:$0xff]   ;;  %v917_v18 = vmov 0.0   ;;  %v830_v19 = vld [vmem:[%s1058_s13 + $0x8] sm:$0xff]   ;;  %vm918_vm0 = vmmov 0   ;;  %v831_v20 = vld [vmem:[%s1058_s13 + $0x10] sm:$0xff]   ;;  %s707_s5 = sshll.u32 %s898_s19, 4 }
  0x42   : > { %733 = vmatprep.subr.bf16.mxu0 %v917_v18  ;;  %749 = vmatprep.mubr.msk.bf16.mxu0 %vm918_vm0, %v917_v18  ;;  %v832_v21 = vld [vmem:[%s1058_s13 + $0x18] sm:$0xff]   ;;  %v833_v22 = vld [vmem:[%s1058_s13 + $0x20] sm:$0xff]   ;;  %v834_v23 = vld [vmem:[%s1058_s13 + $0x28] sm:$0xff]   ;;  %s447_s8 = scalar_lea.vmem [#allocation2], %s707_s5 }
  0x43   : > { %734 = vmatpush3.bf16.msra.mxu0 %v829_v17  ;;  %v835_v24 = vld [vmem:[%s1058_s13 + $0x30] sm:$0xff]   ;;  %v836_v25 = vld [vmem:[%s1058_s13 + $0x38] sm:$0xff]   ;;  %v837_v26 = vld [vmem:[%s1128_s0] sm:$0xff]  }
  0x44   : > { %735 = vmatprep.subr.bf16.mxu0 %v917_v18  ;;  %v452_v27 = vld [vmem:[#allocation3] sm:$0xff]  ;;  %v458_v29 = vld [vmem:[#allocation4] sm:$0xff]  ;;  %v453_v30 = vld [vmem:[#allocation3 + $0x8] sm:$0xff] }
  0x45   : > { %v459_v35 = vld [vmem:[#allocation4 + $0x8] sm:$0xff] }
  0x47   : > { %736 = vmatpush3.bf16.msra.mxu0 %v830_v19 }
  0x48   : > { %737 = vmatprep.subr.bf16.mxu0 %v917_v18 }
  0x4b   : > { %738 = vmatpush3.bf16.msra.mxu0 %v831_v20 }
  0x4c   : > { %739 = vmatprep.subr.bf16.mxu0 %v917_v18 }
  0x4f   : > { %740 = vmatpush3.bf16.msra.mxu0 %v832_v21 }
  0x50   : > { %741 = vmatprep.subr.bf16.mxu0 %v917_v18 }
  0x53   : > { %742 = vmatpush3.bf16.msra.mxu0 %v833_v22 }
  0x54   : > { %743 = vmatprep.subr.bf16.mxu0 %v917_v18 }
  0x57   : > { %744 = vmatpush3.bf16.msra.mxu0 %v834_v23 }
  0x58   : > { %745 = vmatprep.subr.bf16.mxu0 %v917_v18 }
  0x5b   : > { %746 = vmatpush3.bf16.msra.mxu0 %v835_v24 }
  0x5c   : > { %747 = vmatprep.subr.bf16.mxu0 %v917_v18 }
  0x5f   : > { %748 = vmatpush3.bf16.msra.mxu0 %v836_v25 }
  0x62   : > { %750 = vmatmul.mubr.bf16.vlgmr.msra.gmra.mrb[0].mxu0 %v837_v26 }
 0x135   : > { %v439_v28 = vpop.f32.mrb[0].mxu0 }
 0x136   : > { %448 = vst [vmem:[%s447_s8] sm:$0xff] %v439_v28  ;;  %v450_v31 = vmul.f32 %v439_v28, %v439_v28  ;;  %v454_v32 = vadd.f32 %v452_v27, %v439_v28  ;;  %v751_v33 = vpop.f32.mrb[1].mxu0 }
 0x137   : > { %v442_v34 = vpop.f32.mrb[2].mxu0 }
 0x138   : > { %456 = vst [vmem:[#allocation3] sm:$0xff] %v454_v32  ;;  %v460_v36 = vadd.f32 %v458_v29, %v450_v31  ;;  %449 = vst [vmem:[%s447_s8 + $0x8] sm:$0xff] %v442_v34  ;;  %v451_v37 = vmul.f32 %v442_v34, %v442_v34  ;;  %v455_v38 = vadd.f32 %v453_v30, %v442_v34  ;;  %v752_v39 = vpop.f32.mrb[3].mxu0 }
 0x13a   : > { %462 = vst [vmem:[#allocation4] sm:$0xff] %v460_v36  ;;  %457 = vst [vmem:[#allocation3 + $0x8] sm:$0xff] %v455_v38  ;;  %v461_v40 = vadd.f32 %v459_v35, %v451_v37 }
 0x13c   : > { %463 = vst [vmem:[#allocation4 + $0x8] sm:$0xff] %v461_v40 }
 0x13d PF: > { %p708_p2 = scmp.ne.s32.totalorder %s902_s20, 1 }
 0x13e   : > { %p709_p3 = scmp.ne.s32.totalorder (!%p708_p2), %s898_s19, 0 }
 0x13f   : > { %467 = sbr.rel (%p708_p2) target bundleno = 645 (0x285), region = 89 }
 0x146   : > { %471 = sbr.rel (%p709_p3) target bundleno = 501 (0x1f5), region = 93  ;;  %v472_v41 = vld [vmem:[#allocation3] sm:$0xff] (!%p709_p3)  ;;  %v478_v42 = vld [vmem:[#allocation4] sm:$0xff] (!%p709_p3)  ;;  %v473_v43 = vld [vmem:[#allocation3 + $0x8] sm:$0xff] (!%p709_p3)  ;;  %vm502_vm1 = vcmask (!%p709_p3), 7168  }
 0x147   : > { %474 = vadd.xlane.f32.xlu0 (!%p709_p3), %v472_v41  ;;  %480 = vadd.xlane.f32.xlu1 (!%p709_p3), %v478_v42  ;;  %v479_v44 = vld [vmem:[#allocation4 + $0x8] sm:$0xff] (!%p709_p3)  ;;  %v494_v61 = vld [vmem:[%s1130_s2] sm:$0xff] (!%p709_p3)  ;;  %v495_v1 = vld [vmem:[%s1130_s2 + $0x8] sm:$0xff] (!%p709_p3) }
 0x148   : > { %v505_v0 = vld [vmem:[%s1131_s3] sm:$0xff] (!%p709_p3)  ;;  %v506_v6 = vld [vmem:[%s1131_s3 + $0x8] sm:$0xff] (!%p709_p3) }
 0x14b   : > { %476 = vadd.xlane.f32.xlu0 (!%p709_p3), %v473_v43  ;;  %482 = vadd.xlane.f32.xlu1 (!%p709_p3), %v479_v44 }
 0x1d4   : > { %v475_v45 = vpop.xlane.xlu0 %474  ;;  %v481_v46 = vpop.xlane.xlu1 %480 }
 0x1d5   : > { %v484_v47 = vmul.f32 0.00390625, %v475_v45  ;;  %v486_v48 = vmul.f32 0.00390625, %v481_v46 }
 0x1d7   : > { %v488_v49 = vmul.f32 %v484_v47, %v484_v47 }
 0x1d8   : > { %v477_v50 = vpop.xlane.xlu0 %476  ;;  %v483_v51 = vpop.xlane.xlu1 %482 }
 0x1d9   : > { %v490_v52 = vsub.f32 %v486_v48, %v488_v49  ;;  %v485_v53 = vmul.f32 0.00390625, %v477_v50  ;;  %v487_v54 = vmul.f32 0.00390625, %v483_v51 }
 0x1db   : > { %v492_v55 = vmax.f32 %v490_v52, 0.0  ;;  %v489_v56 = vmul.f32 %v485_v53, %v485_v53 }
 0x1dd   : > { %v496_v57 = vadd.f32 1e-05, %v492_v55  ;;  %v491_v58 = vsub.f32 %v487_v54, %v489_v56 }
 0x1df   : > { %838 = vrsqrt.f32 %v496_v57  ;;  %v493_v59 = vmax.f32 %v491_v58, 0.0 }
 0x1e1   : > { %v497_v60 = vadd.f32 1e-05, %v493_v59 }
 0x1e3   : > { %840 = vrsqrt.f32 %v497_v60 }
 0x1e9   : > { %v839_v62 = vpop.eup %838 }
 0x1ea   : > { %v500_v63 = vmul.f32 %v839_v62, %v494_v61 }
 0x1ec   : > { %503 = vst.msk [vmem:[#allocation5] sm:$0xff] %vm502_vm1, %v500_v63  ;;  %v507_v2 = vmul.f32 %v500_v63, %v484_v47 }
 0x1ed   : > { %v841_v3 = vpop.eup %840 }
 0x1ee   : > { %v509_v4 = vsub.f32 %v505_v0, %v507_v2  ;;  %v501_v5 = vmul.f32 %v841_v3, %v495_v1 }
 0x1f0   : > { %511 = vst.msk [vmem:[#allocation6] sm:$0xff] %vm502_vm1, %v509_v4  ;;  %504 = vst.msk [vmem:[#allocation5 + $0x8] sm:$0xff] %vm502_vm1, %v501_v5  ;;  %v508_v7 = vmul.f32 %v501_v5, %v485_v53 }
 0x1f2   : > { %v510_v8 = vsub.f32 %v506_v6, %v508_v7 }
 0x1f4   : > { %512 = vst.msk [vmem:[#allocation6 + $0x8] sm:$0xff] %vm502_vm1, %v510_v8 }
 0x1f5 PF: > { %v517_v10 = vld [vmem:[#allocation5] sm:$0xff]  ;;  %v919_v11 = vmov 0   ;;  %s710_s13 = sshll.u32 %s898_s19, 4 }
 0x1f6   : > { %843 = vset.pattern.permute.xlu1 %v919_v11  ;;  %842 = vset.pattern.permute.xlu0 %v919_v11  ;;  %s514_s15 = scalar_lea.vmem [#allocation2], %s710_s13 }
 0x1f7   : > { %v531_v9 = vld [vmem:[#allocation6] sm:$0xff]  ;;  %521 = vperm.xlu0 %842, %v517_v10   ;;  %v518_v13 = vld [vmem:[#allocation5 + $0x8] sm:$0xff]  ;;  %v515_v14 = vld [vmem:[%s514_s15] sm:$0xff] }
 0x1f8   : > { %535 = vperm.xlu1 %843, %v531_v9   ;;  %v516_v18 = vld [vmem:[%s514_s15 + $0x8] sm:$0xff] }
 0x1fb   : > { %v532_v12 = vld [vmem:[#allocation6 + $0x8] sm:$0xff]  ;;  %526 = vperm.xlu0 %842, %v518_v13  }
 0x1fc   : > { %540 = vperm.xlu1 %843, %v532_v12  }
 0x276   : > { %v522_v16 = vpop.permute.xlu0 %521 }
 0x277   : > { %v536_v15 = vpop.permute.xlu1 %535  ;;  %v529_v17 = vmul.f32 %v522_v16, %v515_v14 }
 0x279   : > { %v543_v19 = vadd.f32 %v536_v15, %v529_v17 }
 0x27a   : > { %v527_v20 = vpop.permute.xlu0 %526 }
 0x27b   : > { %v530_v21 = vmul.f32 %v527_v20, %v516_v18  ;;  %v541_v22 = vpop.permute.xlu1 %540  ;;  %v547_v23 = vmul.f32 0.01, %v543_v19  ;;  %vm545_vm2 = vcmp.ge.f32.partialorder %v543_v19, 0.0 }
 0x27d   : > { %v544_v24 = vadd.f32 %v541_v22, %v530_v21  ;;  %v549_v26 = vsel %vm545_vm2, %v543_v19, %v547_v23 }
 0x27f   : > { %vm546_vm3 = vcmp.ge.f32.partialorder %v544_v24, 0.0  ;;  %v548_v25 = vmul.f32 0.01, %v544_v24 }
 0x281   : > { %v550_v27 = vsel %vm546_vm3, %v544_v24, %v548_v25 }
 0x282   : > { %v722_v28 = vpack.c.bf16 %v550_v27, %v549_v26 }
 0x284   : > { %723 = vst [vmem:[%s1060_s24] sm:$0xff] %v722_v28  }
 0x285 PF: > { %567 = sbr.rel (!%p1019_p8) target bundleno = 653 (0x28d), region = 97 }
 0x286   : > { %s568_s17 = smul.u32 (%p1019_p8), %s898_s19, %s902_s20 }
 0x288   : > { %s714_s5 = sshll.u32 (%p1019_p8), %s568_s17, 2 }
 0x289   : > { %s570_s10 = scalar_lea.vmem (%p1019_p8), %s1132_s4, %s714_s5 }
 0x28b   : > { %v586_v29 = vld [vmem:[%s1060_s24] sm:$0xf] (%p1019_p8)  ;;  %v588_v30 = vld [vmem:[%s1060_s24 + $0x4] sm:$0xf] (%p1019_p8) }
 0x28c   : > { %587 = vst [vmem:[%s570_s10] sm:$0xf] %v586_v29  ;;  %589 = vst [vmem:[%s570_s10 + $0x8] sm:$0xf] %v588_v30 }
 0x28d PF: > { %s14_s23 = sadd.s32 1, %s914_s23   ;;  %s1135_s15 = smov %s886_s16 }
 0x28e   : > { %p11_p4 = scmp.ge.s32.totalorder %s14_s23, 6   ;;  %s1136_s16 = smov %s1024_s27 }
 0x28f   : > { %s1137_s17 = smov %s894_s18  ;;  %s1138_s18 = smov %s1027_s29 }
 0x290   : > { %s1139_s19 = smov %s906_s21  ;;  %s1140_s20 = smov %s910_s22 }
 0x291   : > { %s1141_s21 = smov %s1144_s25  ;;  %s1142_s22 = smov %s1148_s26 }
 0x292   :  { %13 = sbr.rel (!%p11_p4) target bundleno = 5 (0x5), region = 171 }

// kernel: discriminator_forward.5
= control target key start
LH: loop header
LB: loop body
LE: loop exit
PB: predicated region body
PF: predicated region fallthrough
CT: control target
= control target key end

     0   :  { %s931_s15 = smov 0   ;;  %s933_s16 = smov 0   ;;  %s1060_s0 = inlined_call_operand.vmem [shape: bf16[32,256], index: 0, kind: input, shape index: {}]   ;;  %s1061_s1 = inlined_call_operand.vmem [shape: bf16[256,128], index: 1, kind: input, shape index: {}]   ;;  %s1062_s2 = inlined_call_operand.vmem [shape: f32[32,1], index: 2, kind: input, shape index: {}]   ;;  %s1063_s3 = inlined_call_operand.vmem [shape: f32[32,1], index: 3, kind: input, shape index: {}]   ;;  %s1064_s4 = inlined_call_operand.vmem [shape: bf16[32,128], index: 4, kind: output, shape index: {}]  }
   0x1   :  { %s935_s17 = smov 0  }
   0x2 LB: > { %s26_s18 = sadd.s32 1, %s899_s16  ;;  %p733_p0 = scmp.ge.s32.totalorder %s903_s17, 1  ;;  %s903_s17 = sphi %s935_s17, %s14_s17   ;;  %s899_s16 = sphi %s933_s16, %s1066_s16   ;;  %s895_s15 = sphi %s931_s15, %s1065_s15  }
   0x3   : > { %p28_p1 = scmp.ge.s32.totalorder %s26_s18, 2  ;;  %p183_p2 = scmp.lt.s32.totalorder %s903_s17, 3 }
   0x5   : > { %s1068_s18 = smov (%p28_p1, %s26_s18), 0  ;;  %p184_p3 = pnand %p733_p0, %p183_p2 }
   0x6   : > { %p734_p4 = scmp.ne.s32.totalorder (!%p184_p3), %s895_s15, 0 }
   0x7   : > { %187 = sbr.rel (%p184_p3) target bundleno = 611 (0x263), region = 36 }
   0xe   : > { %228 = sbr.rel (%p734_p4) target bundleno = 268 (0x10c), region = 40  ;;  %v849_v0 = vld [vmem:[%s1061_s1 + $0x40] sm:$0xff] (!%p734_p4)   ;;  %v851_v2 = vld [vmem:[%s1061_s1 + $0x48] sm:$0xff] (!%p734_p4)   ;;  %v853_v4 = vld [vmem:[%s1061_s1 + $0x50] sm:$0xff] (!%p734_p4)  }
   0xf   : > { %v850_v1 = vld [vmem:[%s1061_s1] sm:$0xff] (!%p734_p4)   ;;  %779 = vmatprep.subr.bf16.mxu0 (!%p734_p4), %v849_v0  ;;  %807 = vmatprep.subr.bf16.mxu1 (!%p734_p4), %v849_v0  ;;  %v852_v3 = vld [vmem:[%s1061_s1 + $0x8] sm:$0xff] (!%p734_p4)   ;;  %v854_v5 = vld [vmem:[%s1061_s1 + $0x10] sm:$0xff] (!%p734_p4)  }
  0x10   : > { %780 = vmatpush3.bf16.msra.mxu0 (!%p734_p4), %v850_v1  ;;  %815 = vmatpush3.bf16.msra.mxu1 (!%p734_p4), %v850_v1  ;;  %v855_v6 = vld [vmem:[%s1061_s1 + $0x58] sm:$0xff] (!%p734_p4)   ;;  %v857_v8 = vld [vmem:[%s1061_s1 + $0x60] sm:$0xff] (!%p734_p4)   ;;  %v859_v10 = vld [vmem:[%s1061_s1 + $0x68] sm:$0xff] (!%p734_p4)  }
  0x11   : > { %781 = vmatprep.subr.bf16.mxu0 (!%p734_p4), %v851_v2  ;;  %808 = vmatprep.subr.bf16.mxu1 (!%p734_p4), %v851_v2  ;;  %v856_v7 = vld [vmem:[%s1061_s1 + $0x18] sm:$0xff] (!%p734_p4)   ;;  %v858_v9 = vld [vmem:[%s1061_s1 + $0x20] sm:$0xff] (!%p734_p4)   ;;  %v860_v13 = vld [vmem:[%s1061_s1 + $0x28] sm:$0xff] (!%p734_p4)  }
  0x12   : > { %v867_v11 = vld [vmem:[%s1060_s0 + $0x4] ss:$8 sps:$4 sm:$0xff] (!%p734_p4)   ;;  %v870_v12 = vld [vmem:[%s1060_s0 + $0x14] ss:$8 sps:$4 sm:$0xff] (!%p734_p4)   ;;  %v865_v18 = vld [vmem:[%s1060_s0] ss:$8 sps:$4 sm:$0xff] (!%p734_p4)  }
  0x13   : > { %v861_v14 = vld [vmem:[%s1061_s1 + $0x70] sm:$0xff] (!%p734_p4)   ;;  %425 = vmatprep.mubr.bf16.mxu0 (!%p734_p4), %v867_v11  ;;  %433 = vmatprep.mubr.bf16.mxu1 (!%p734_p4), %v870_v12  ;;  %v863_v16 = vld [vmem:[%s1061_s1 + $0x78] sm:$0xff] (!%p734_p4)  }
  0x14   : > { %782 = vmatpush3.bf16.msra.mxu0 (!%p734_p4), %v852_v3  ;;  %816 = vmatpush3.bf16.msra.mxu1 (!%p734_p4), %v852_v3  ;;  %v862_v15 = vld [vmem:[%s1061_s1 + $0x30] sm:$0xff] (!%p734_p4)   ;;  %v864_v17 = vld [vmem:[%s1061_s1 + $0x38] sm:$0xff] (!%p734_p4)  }
  0x15   : > { %783 = vmatprep.subr.bf16.mxu0 %v853_v4  ;;  %809 = vmatprep.subr.bf16.mxu1 %v853_v4  ;;  %v868_v19 = vld [vmem:[%s1060_s0 + $0x10] ss:$8 sps:$4 sm:$0xff]  }
  0x18   : > { %784 = vmatpush3.bf16.msra.mxu0 %v854_v5  ;;  %817 = vmatpush3.bf16.msra.mxu1 %v854_v5 }
  0x19   : > { %785 = vmatprep.subr.bf16.mxu0 %v855_v6  ;;  %810 = vmatprep.subr.bf16.mxu1 %v855_v6 }
  0x1c   : > { %786 = vmatpush3.bf16.msra.mxu0 %v856_v7  ;;  %818 = vmatpush3.bf16.msra.mxu1 %v856_v7 }
  0x1d   : > { %787 = vmatprep.subr.bf16.mxu0 %v857_v8  ;;  %811 = vmatprep.subr.bf16.mxu1 %v857_v8 }
  0x20   : > { %788 = vmatpush3.bf16.msra.mxu0 %v858_v9  ;;  %819 = vmatpush3.bf16.msra.mxu1 %v858_v9 }
  0x21   : > { %789 = vmatprep.subr.bf16.mxu0 %v859_v10  ;;  %812 = vmatprep.subr.bf16.mxu1 %v859_v10 }
  0x24   : > { %790 = vmatpush3.bf16.msra.mxu0 %v860_v13  ;;  %820 = vmatpush3.bf16.msra.mxu1 %v860_v13 }
  0x25   : > { %791 = vmatprep.subr.bf16.mxu0 %v861_v14  ;;  %813 = vmatprep.subr.bf16.mxu1 %v861_v14 }
  0x28   : > { %792 = vmatpush3.bf16.msra.mxu0 %v862_v15  ;;  %821 = vmatpush3.bf16.msra.mxu1 %v862_v15 }
  0x29   : > { %793 = vmatprep.subr.bf16.mxu0 %v863_v16  ;;  %814 = vmatprep.subr.bf16.mxu1 %v863_v16 }
  0x2c   : > { %794 = vmatpush3.bf16.msra.mxu0 %v864_v17  ;;  %822 = vmatpush3.bf16.msra.mxu1 %v864_v17 }
  0x2f   : > { %426 = vmatmul.mubr.bf16.vlgmr.msra.gmra.mrb[0].mxu0 %v865_v18  ;;  %434 = vmatmul.mubr.bf16.vlgmr.msra.gmra.mrb[0].mxu1 %v868_v19 }
 0x102   : > { %v795_v20 = vpop.f32.mrb[0].mxu0  ;;  %v801_v21 = vpop.f32.mrb[0].mxu1 }
 0x103   : > { %v796_v22 = vpop.f32.mrb[1].mxu0  ;;  %v802_v23 = vpop.f32.mrb[1].mxu1 }
 0x104   : > { %v797_v24 = vadd.f32 %v796_v22, %v795_v20  ;;  %v803_v25 = vadd.f32 %v802_v23, %v801_v21  ;;  %v798_v26 = vpop.f32.mrb[2].mxu0  ;;  %v804_v27 = vpop.f32.mrb[2].mxu1 }
 0x105   : > { %v799_v28 = vpop.f32.mrb[3].mxu0  ;;  %v805_v29 = vpop.f32.mrb[3].mxu1 }
 0x106   : > { %444 = vst [vmem:[#allocation2] sm:$0xff] %v797_v24  ;;  %v448_v30 = vmul.f32 %v797_v24, %v797_v24  ;;  %446 = vst [vmem:[#allocation2 + $0x10] sm:$0xff] %v803_v25  ;;  %v450_v31 = vmul.f32 %v803_v25, %v803_v25  ;;  %v800_v32 = vadd.f32 %v799_v28, %v798_v26 }
 0x107   : > { %v806_v33 = vadd.f32 %v805_v29, %v804_v27  ;;  %460 = vst [vmem:[#allocation3] sm:$0xff] %v797_v24  ;;  %462 = vst [vmem:[#allocation3 + $0x10] sm:$0xff] %v803_v25 }
 0x108   : > { %445 = vst [vmem:[#allocation2 + $0x8] sm:$0xff] %v800_v32  ;;  %v449_v34 = vmul.f32 %v800_v32, %v800_v32  ;;  %472 = vst [vmem:[#allocation4] sm:$0xff] %v448_v30 }
 0x109   : > { %447 = vst [vmem:[#allocation2 + $0x18] sm:$0xff] %v806_v33  ;;  %v451_v35 = vmul.f32 %v806_v33, %v806_v33  ;;  %474 = vst [vmem:[#allocation4 + $0x10] sm:$0xff] %v450_v31 }
 0x10a   : > { %461 = vst [vmem:[#allocation3 + $0x8] sm:$0xff] %v800_v32  ;;  %463 = vst [vmem:[#allocation3 + $0x18] sm:$0xff] %v806_v33 }
 0x10b   : > { %473 = vst [vmem:[#allocation4 + $0x8] sm:$0xff] %v449_v34  ;;  %475 = vst [vmem:[#allocation4 + $0x18] sm:$0xff] %v451_v35 }
 0x10c PF: > { %p755_p5 = scmp.ne.s32.totalorder %s895_s15, 1 }
 0x10d   : > { %v905_v44 = vmov (!%p755_p5), 0   ;;  %v529_v13 = vld [vmem:[%s1062_s2 + $0x8] sm:$0xff] (!%p755_p5)  ;;  %v528_v14 = vld [vmem:[%s1062_s2] sm:$0xff] (!%p755_p5)  ;;  %vm544_vm0 = vcmask (!%p755_p5), 7168   ;;  %v531_v20 = vld [vmem:[%s1062_s2 + $0x18] sm:$0xff] (!%p755_p5) }
 0x10e   : > { %479 = sbr.rel (%p755_p5) target bundleno = 611 (0x263), region = 48  ;;  %v486_v36 = vld [vmem:[#allocation3 + $0x10] sm:$0xff] (!%p755_p5)  ;;  %v484_v37 = vld [vmem:[#allocation3] sm:$0xff] (!%p755_p5)  ;;  %872 = vset.pattern.permute.xlu1 (!%p755_p5), %v905_v44  ;;  %871 = vset.pattern.permute.xlu0 (!%p755_p5), %v905_v44  ;;  %v550_v18 = vld [vmem:[%s1063_s3 + $0x8] sm:$0xff] (!%p755_p5) }
 0x10f   : > { %492 = vadd.xlane.f32.xlu1 (!%p755_p5), %v486_v36  ;;  %488 = vadd.xlane.f32.xlu0 (!%p755_p5), %v484_v37  ;;  %v496_v41 = vld [vmem:[#allocation4] sm:$0xff] (!%p755_p5)  ;;  %v530_v23 = vld [vmem:[%s1062_s2 + $0x10] sm:$0xff] (!%p755_p5)  ;;  %v552_v30 = vld [vmem:[%s1063_s3 + $0x18] sm:$0xff] (!%p755_p5) }
 0x110   : > { %v498_v43 = vld [vmem:[#allocation4 + $0x10] sm:$0xff] (!%p755_p5)  ;;  %v549_v22 = vld [vmem:[%s1063_s3] sm:$0xff] (!%p755_p5) }
 0x111   : > { %v487_v38 = vld [vmem:[#allocation3 + $0x18] sm:$0xff] (!%p755_p5)  ;;  %v485_v39 = vld [vmem:[#allocation3 + $0x8] sm:$0xff] (!%p755_p5)  ;;  %v551_v33 = vld [vmem:[%s1063_s3 + $0x10] sm:$0xff] (!%p755_p5) }
 0x112   : > { %v497_v40 = vld [vmem:[#allocation4 + $0x8] sm:$0xff] (!%p755_p5)  ;;  %v499_v42 = vld [vmem:[#allocation4 + $0x18] sm:$0xff] (!%p755_p5) }
 0x113   : > { %494 = vadd.xlane.f32.xlu1 (!%p755_p5), %v487_v38  ;;  %490 = vadd.xlane.f32.xlu0 (!%p755_p5), %v485_v39 }
 0x117   : > { %502 = vadd.xlane.f32.xlu1 %v497_v40  ;;  %500 = vadd.xlane.f32.xlu0 %v496_v41 }
 0x11b   : > { %506 = vadd.xlane.f32.xlu1 %v499_v42  ;;  %504 = vadd.xlane.f32.xlu0 %v498_v43 }
 0x19c   : > { %v493_v45 = vpop.xlane.xlu1 %492  ;;  %v489_v46 = vpop.xlane.xlu0 %488 }
 0x19d   : > { %v508_v49 = vmul.f32 0.015625, %v489_v46  ;;  %v510_v51 = vmul.f32 0.015625, %v493_v45 }
 0x19f   : > { %v516_v55 = vmul.f32 %v508_v49, %v508_v49  ;;  %v518_v61 = vmul.f32 %v510_v51, %v510_v51 }
 0x1a0   : > { %v495_v47 = vpop.xlane.xlu1 %494  ;;  %v491_v48 = vpop.xlane.xlu0 %490 }
 0x1a1   : > { %v509_v50 = vmul.f32 0.015625, %v491_v48  ;;  %v511_v52 = vmul.f32 0.015625, %v495_v47  ;;  %v567_v47 = vld [vmem:[#allocation2] sm:$0xff] }
 0x1a3   : > { %v517_v56 = vmul.f32 %v509_v50, %v509_v50  ;;  %v519_v62 = vmul.f32 %v511_v52, %v511_v52 }
 0x1a4   : > { %v503_v53 = vpop.xlane.xlu1 %502  ;;  %v501_v54 = vpop.xlane.xlu0 %500 }
 0x1a5   : > { %v513_v57 = vmul.f32 0.015625, %v503_v53  ;;  %v512_v58 = vmul.f32 0.015625, %v501_v54 }
 0x1a7   : > { %v521_v59 = vsub.f32 %v513_v57, %v517_v56  ;;  %v520_v60 = vsub.f32 %v512_v58, %v516_v55  ;;  %v569_v55 = vld [vmem:[#allocation2 + $0x10] sm:$0xff] }
 0x1a8   : > { %v507_v63 = vpop.xlane.xlu1 %506  ;;  %v505_v0 = vpop.xlane.xlu0 %504 }
 0x1a9   : > { %v525_v1 = vmax.f32 %v521_v59, 0.0  ;;  %v524_v2 = vmax.f32 %v520_v60, 0.0  ;;  %v515_v3 = vmul.f32 0.015625, %v507_v63  ;;  %v514_v4 = vmul.f32 0.015625, %v505_v0 }
 0x1ab   : > { %v533_v5 = vadd.f32 1e-05, %v525_v1  ;;  %v532_v6 = vadd.f32 1e-05, %v524_v2  ;;  %v523_v7 = vsub.f32 %v515_v3, %v519_v62  ;;  %v522_v8 = vsub.f32 %v514_v4, %v518_v61  ;;  %v570_v61 = vld [vmem:[#allocation2 + $0x18] sm:$0xff] }
 0x1ad   : > { %873 = vrsqrt.f32 %v533_v5  ;;  %v527_v9 = vmax.f32 %v523_v7, 0.0  ;;  %v526_v10 = vmax.f32 %v522_v8, 0.0 }
 0x1ae   : > { %875 = vrsqrt.f32 %v532_v6 }
 0x1af   : > { %v535_v11 = vadd.f32 1e-05, %v527_v9  ;;  %v534_v12 = vadd.f32 1e-05, %v526_v10 }
 0x1b1   : > { %877 = vrsqrt.f32 %v535_v11 }
 0x1b2   : > { %879 = vrsqrt.f32 %v534_v12 }
 0x1b7   : > { %v874_v15 = vpop.eup %873 }
 0x1b8   : > { %v876_v16 = vpop.eup %875  ;;  %v541_v17 = vmul.f32 %v874_v15, %v529_v13 }
 0x1b9   : > { %v540_v19 = vmul.f32 %v876_v16, %v528_v14 }
 0x1ba   : > { %546 = vst.msk [vmem:[#allocation5 + $0x8] sm:$0xff] %vm544_vm0, %v541_v17  ;;  %v554_v21 = vmul.f32 %v541_v17, %v509_v50 }
 0x1bb   : > { %v878_v24 = vpop.eup %877  ;;  %545 = vst.msk [vmem:[#allocation5] sm:$0xff] %vm544_vm0, %v540_v19  ;;  %v553_v25 = vmul.f32 %v540_v19, %v508_v49 }
 0x1bc   : > { %v880_v26 = vpop.eup %879  ;;  %v558_v27 = vsub.f32 %v550_v18, %v554_v21  ;;  %v543_v28 = vmul.f32 %v878_v24, %v531_v20 }
 0x1bd   : > { %v557_v29 = vsub.f32 %v549_v22, %v553_v25  ;;  %v542_v31 = vmul.f32 %v880_v26, %v530_v23 }
 0x1be   : > { %562 = vst.msk [vmem:[#allocation6 + $0x8] sm:$0xff] %vm544_vm0, %v558_v27  ;;  %548 = vst.msk [vmem:[#allocation5 + $0x18] sm:$0xff] %vm544_vm0, %v543_v28  ;;  %v556_v32 = vmul.f32 %v543_v28, %v511_v52 }
 0x1bf   : > { %561 = vst.msk [vmem:[#allocation6] sm:$0xff] %vm544_vm0, %v557_v29  ;;  %547 = vst.msk [vmem:[#allocation5 + $0x10] sm:$0xff] %vm544_vm0, %v542_v31  ;;  %v555_v34 = vmul.f32 %v542_v31, %v510_v51  ;;  %v568_v51 = vld [vmem:[#allocation2 + $0x8] sm:$0xff] }
 0x1c0   : > { %v560_v35 = vsub.f32 %v552_v30, %v556_v32 }
 0x1c1   : > { %v559_v36 = vsub.f32 %v551_v33, %v555_v34  ;;  %v572_v37 = vld [vmem:[#allocation5 + $0x8] sm:$0xff] }
 0x1c2   : > { %564 = vst.msk [vmem:[#allocation6 + $0x18] sm:$0xff] %vm544_vm0, %v560_v35  ;;  %582 = vperm.xlu1 %872, %v572_v37   ;;  %v571_v38 = vld [vmem:[#allocation5] sm:$0xff] }
 0x1c3   : > { %563 = vst.msk [vmem:[#allocation6 + $0x10] sm:$0xff] %vm544_vm0, %v559_v36  ;;  %577 = vperm.xlu0 %871, %v571_v38  }
 0x1c5   : > { %v574_v40 = vld [vmem:[#allocation5 + $0x18] sm:$0xff]  ;;  %v600_v42 = vld [vmem:[#allocation6 + $0x8] sm:$0xff] }
 0x1c6   : > { %v573_v39 = vld [vmem:[#allocation5 + $0x10] sm:$0xff]  ;;  %v599_v41 = vld [vmem:[#allocation6] sm:$0xff] }
 0x1c7   : > { %587 = vperm.xlu1 %872, %v573_v39  }
 0x1c9   : > { %v602_v44 = vld [vmem:[#allocation6 + $0x18] sm:$0xff] }
 0x1ca   : > { %v601_v43 = vld [vmem:[#allocation6 + $0x10] sm:$0xff] }
 0x1cb   : > { %592 = vperm.xlu1 %872, %v574_v40  }
 0x1cf   : > { %605 = vperm.xlu1 %872, %v599_v41  }
 0x1d3   : > { %610 = vperm.xlu1 %872, %v600_v42  }
 0x1d7   : > { %615 = vperm.xlu1 %872, %v601_v43  }
 0x1db   : > { %620 = vperm.xlu1 %872, %v602_v44  }
 0x241   : > { %v583_v45 = vpop.permute.xlu1 %582 }
 0x242   : > { %v578_v48 = vpop.permute.xlu0 %577  ;;  %v596_v54 = vmul.f32 %v583_v45, %v568_v51 }
 0x243   : > { %v595_v50 = vmul.f32 %v578_v48, %v567_v47 }
 0x246   : > { %v588_v46 = vpop.permute.xlu1 %587 }
 0x247   : > { %v597_v59 = vmul.f32 %v588_v46, %v569_v55 }
 0x24a   : > { %v593_v49 = vpop.permute.xlu1 %592 }
 0x24b   : > { %v598_v3 = vmul.f32 %v593_v49, %v570_v61 }
 0x24e   : > { %v606_v52 = vpop.permute.xlu1 %605 }
 0x24f   : > { %v623_v53 = vadd.f32 %v606_v52, %v595_v50 }
 0x251   : > { %v631_v57 = vmul.f32 0.01, %v623_v53  ;;  %vm627_vm1 = vcmp.ge.f32.partialorder %v623_v53, 0.0 }
 0x252   : > { %v611_v56 = vpop.permute.xlu1 %610 }
 0x253   : > { %v624_v58 = vadd.f32 %v611_v56, %v596_v54  ;;  %v635_v63 = vsel %vm627_vm1, %v623_v53, %v631_v57 }
 0x255   : > { %vm628_vm2 = vcmp.ge.f32.partialorder %v624_v58, 0.0  ;;  %v632_v60 = vmul.f32 0.01, %v624_v58 }
 0x256   : > { %v616_v62 = vpop.permute.xlu1 %615 }
 0x257   : > { %v636_v0 = vsel %vm628_vm2, %v624_v58, %v632_v60  ;;  %v625_v1 = vadd.f32 %v616_v62, %v597_v59 }
 0x258   : > { %v771_v2 = vpack.c.bf16 %v636_v0, %v635_v63 }
 0x259   : > { %v633_v5 = vmul.f32 0.01, %v625_v1  ;;  %vm629_vm3 = vcmp.ge.f32.partialorder %v625_v1, 0.0 }
 0x25a   : > { %772 = vst [vmem:[%s1064_s4] sm:$0xff] %v771_v2   ;;  %v621_v4 = vpop.permute.xlu1 %620 }
 0x25b   : > { %v626_v6 = vadd.f32 %v621_v4, %v598_v3  ;;  %v637_v8 = vsel %vm629_vm3, %v625_v1, %v633_v5 }
 0x25d   : > { %vm630_vm4 = vcmp.ge.f32.partialorder %v626_v6, 0.0  ;;  %v634_v7 = vmul.f32 0.01, %v626_v6 }
 0x25f   : > { %v638_v9 = vsel %vm630_vm4, %v626_v6, %v634_v7 }
 0x260   : > { %v776_v10 = vpack.c.bf16 %v638_v9, %v637_v8 }
 0x262   : > { %778 = vst [vmem:[%s1064_s4 + $0x8] sm:$0xff] %v776_v10  }
 0x263 PF: > { %s14_s17 = sadd.s32 1, %s903_s17   ;;  %s1065_s15 = smov %s899_s16 }
 0x264   : > { %p11_p6 = scmp.ge.s32.totalorder %s14_s17, 4   ;;  %s1066_s16 = smov %s1068_s18 }
 0x266   :  { %13 = sbr.rel (!%p11_p6) target bundleno = 2 (0x2), region = 84 }

</bundles_post_ra>
